<compile_context>
chip_gen: v6e
topology: v6e:2x2x1
jax: 0.10.0
libtpu: 0.0.40
codegen_flags: <defaults>
</compile_context>

<pallas_src>
import functools

import jax
import jax.numpy as jnp
from jax import lax
from jax.experimental import pallas as pl
from jax.experimental.pallas import tpu as pltpu

SLIDE_WINSIZE = 9.0  # 3*3*1 — PartialConv2d with multi_channel=False (single-channel mask)


def _round_up(v, m):
    return (v + m - 1) // m * m


def _vmem_capacity_bytes():
    try:
        cap = int(getattr(pltpu.get_tpu_info(), "vmem_capacity_bytes"))
        if cap > 0:
            return cap
    except Exception:
        pass
    return 64 * 1024 * 1024  # v7x per-TC capacity: safe lower bound for all generations


def _vmem_estimate(TH, W_p, Cin_p, Cout_p, mm_bytes, out_bytes):
    """Rough per-grid-step VMEM footprint (bytes), incl. double-buffered pipeline blocks."""
    L1, L0, LO = (TH + 4) * W_p, (TH + 2) * W_p, TH * W_p
    conv1 = mm_bytes * Cin_p * (3 * L1 + 9 * L0) + 4 * Cout_p * L0
    conv2 = mm_bytes * Cout_p * (3 * L0 + 9 * LO) + 4 * Cout_p * (L0 + LO)
    blocks = 2 * (mm_bytes * Cin_p * (LO + 4 * W_p) + 4 * 2 * (LO + 2 * W_p)
                  + out_bytes * Cout_p * LO)
    weights = 2 * (mm_bytes * 9 * Cout_p * (Cin_p + Cout_p) + 4 * 2 * Cout_p)
    return int(1.2 * (conv1 + conv2)) + blocks + weights + (2 << 20)


def _pick_row_tile(H, W_p, Cin_p, Cout_p, mm_bytes, out_bytes, budget):
    cands = sorted({t for t in (256, 192, 128, 96, 64, 48, 32, 24, 16, 8, 4, 2, 1, H)
                    if 0 < t <= max(H, 1)}, reverse=True)
    for th in cands:
        if _vmem_estimate(th, W_p, Cin_p, Cout_p, mm_bytes, out_bytes) <= budget:
            return th
    return 1


def _conv3x3_band(a, w_ref, mask_left, mask_right, W_p, n_out_rows):
    """3x3 'SAME' conv of a channel-major row band as ONE fused fat-K MXU matmul.

    a: (C, (n_out_rows + 2) * W_p) slab; rows flattened onto the lane axis in W_p-sized
       groups (W_p % 128 == 0), with one zero halo row above/below and zero cols at x >= W.
    w_ref: (Cout, 9*C) fused-K weights, tap order (ky, kx, cin).
    Returns (Cout, n_out_rows * W_p) f32.
    """
    L_in = a.shape[1]
    L_out = n_out_rows * W_p
    # dx = -1 / +1 taps: ONE roll + ONE border select each, shared by all three dy taps.
    left = jnp.where(mask_left[:, :L_in], pltpu.roll(a, shift=1, axis=1), 0)
    right = jnp.where(mask_right[:, :L_in], pltpu.roll(a, shift=L_in - 1, axis=1), 0)
    views = []
    for ky in range(3):                           # dy = ky - 1: aligned lane slice (free)
        off = ky * W_p
        views.append(left[:, off:off + L_out])    # dx = -1
        views.append(a[:, off:off + L_out])       # dx =  0
        views.append(right[:, off:off + L_out])   # dx = +1
    cat = jnp.concatenate(views, axis=0)          # (9*C, L_out), sublane-aligned concat
    return jnp.dot(w_ref[...], cat, preferred_element_type=jnp.float32)


def _unet_conv2_part_kernel(x_ref, xhalo_ref, aux_ref, auxhalo_ref,
                            w1_ref, b1_ref, w2_ref, b2_ref, out_ref,
                            *, W, W_p, TH, matmul_dtype):
    L1 = (TH + 4) * W_p            # conv1 input band (2 halo rows each side)
    # Border masks (periodic in W_p), built ONCE and reused by both convs.
    col = lax.broadcasted_iota(jnp.int32, (1, L1), 1) % W_p
    mask_left = col >= 1           # tap in(x-1) invalid at x == 0 (also kills roll wrap)
    mask_right = col <= W - 2      # tap in(x+1) invalid at x >= W-1

    # ---- conv1: PartialConv2d(3x3, pad=1) — fused fat-K matmul (K = 9*Cin_p) -------------
    xhalo = xhalo_ref[...]                                     # (Cin_p, 4*W_p), matmul_dtype
    a1 = jnp.concatenate([xhalo[:, :2 * W_p], x_ref[...], xhalo[:, 2 * W_p:]], axis=1)
    raw1 = _conv3x3_band(a1, w1_ref, mask_left, mask_right, W_p, TH + 2)   # (Cout_p,*) f32

    auxhalo = auxhalo_ref[...]                                 # (2, 2*W_p) f32
    auxw = jnp.concatenate([auxhalo[:, :W_p], aux_ref[...], auxhalo[:, W_p:]], axis=1)
    ratio = auxw[0:1, :]                                       # (1, L0) mask_ratio
    upd = auxw[1:2, :]                                         # (1, L0) update_mask*validity
    # PartialConv bias handling: ((raw - b)*ratio + b)*update, raw1 here is bias-free.
    h = jnp.maximum((raw1 * ratio + b1_ref[...]) * upd, 0.0)   # ReLU, f32
    h = h.astype(matmul_dtype)                                 # bf16 im2col for conv2

    # ---- conv2: Conv2d(3x3, pad=1) + bias, ReLU — fused fat-K matmul (K = 9*Cout_p) ------
    raw2 = _conv3x3_band(h, w2_ref, mask_left, mask_right, W_p, TH)        # (Cout_p, TH*W_p)
    out_ref[...] = jnp.maximum(raw2 + b2_ref[...], 0.0).astype(out_ref.dtype)


def unet_conv2_part_forward(x_nchw, params, mask_nchw=None, *,
                            matmul_dtype=jnp.bfloat16, out_dtype=jnp.float32,
                            row_tile=None):
    """Forward pass of unetConv2_part (norm_layer=None).

    x_nchw:    (N, Cin, H, W) float array (PyTorch NCHW convention).
    params:    dict with w1 (3,3,Cin,Cout) HWIO, b1 (Cout,), w2 (3,3,Cout,Cout), b2 (Cout,).
    mask_nchw: optional (N, 1, H, W) mask (PartialConv2d, multi_channel=False).
    matmul_dtype: MXU/im2col operand dtype (bf16 default; float32 for bit-accurate checks).
    out_dtype:    output dtype (float32 default; bf16 halves HBM writeback if accepted).
    row_tile:     force the row-band size (None -> VMEM-aware auto choice).
    """
    N, Cin, H, W = x_nchw.shape
    Cout = params["w1"].shape[-1]
    Cin_p, Cout_p = _round_up(Cin, 8), _round_up(Cout, 8)
    W_p = _round_up(W, 128)
    mm_bytes = jnp.dtype(matmul_dtype).itemsize
    out_bytes = jnp.dtype(out_dtype).itemsize

    vmem_cap = _vmem_capacity_bytes()
    vmem_limit = int(min(0.85 * vmem_cap, 100 * 1024 * 1024))
    if row_tile is None:
        TH = _pick_row_tile(H, W_p, Cin_p, Cout_p, mm_bytes, out_bytes,
                            int(0.85 * vmem_limit))
    else:
        TH = max(1, min(int(row_tile), H))
    T = -(-H // TH)
    H_t = T * TH

    # --- activations: NCHW, channel-pad to 8, W zero-pad to 128; mask premultiplied in f32 ---
    xf = x_nchw.astype(jnp.float32)
    if mask_nchw is not None:
        xf = xf * mask_nchw.astype(jnp.float32)
    x4 = jnp.pad(xf, ((0, 0), (0, Cin_p - Cin), (0, H_t - H), (0, W_p - W))).astype(matmul_dtype)
    x_main = x4.reshape(N, Cin_p, H_t * W_p)           # rows flattened onto lanes (free reshape)
    # 2-row halos above/below each band (zeros outside the image) -> tiny side input
    xrows = jnp.pad(x4, ((0, 0), (0, 0), (2, 2), (0, 0)))
    hidx = (jnp.arange(T)[:, None] * TH
            + jnp.asarray([0, 1, TH + 2, TH + 3])[None, :]).reshape(-1)
    x_halo = (jnp.take(xrows, hidx, axis=2)
              .reshape(N, Cin_p, T, 4 * W_p).transpose(0, 2, 1, 3))   # (N, T, Cin_p, 4*W_p)

    # --- PartialConv2d statistics: mask_ratio & update_mask packed into one f32 slab ---------
    if mask_nchw is None:
        ry = (3.0 - (jnp.arange(H) == 0).astype(jnp.float32)
              - (jnp.arange(H) == H - 1).astype(jnp.float32))
        rx = (3.0 - (jnp.arange(W) == 0).astype(jnp.float32)
              - (jnp.arange(W) == W - 1).astype(jnp.float32))
        cnt = (ry[:, None] * rx[None, :])[None, None]                 # (1,1,H,W): 4 / 6 / 9
        ratio = SLIDE_WINSIZE / (cnt + 1e-8)
        upd = jnp.ones_like(cnt)                                      # update_mask == 1 inside
        Na = 1
    else:
        m = mask_nchw.astype(jnp.float32)
        dn = lax.conv_dimension_numbers(m.shape, (1, 1, 3, 3), ("NCHW", "OIHW", "NCHW"))
        cnt = lax.conv_general_dilated(m, jnp.ones((1, 1, 3, 3), jnp.float32), (1, 1),
                                       "SAME", dimension_numbers=dn)
        upd = jnp.clip(cnt, 0.0, 1.0)
        ratio = (SLIDE_WINSIZE / (cnt + 1e-8)) * upd
        Na = N
    aux = jnp.concatenate([ratio, upd], axis=1).astype(jnp.float32)   # (Na, 2, H, W)
    aux = jnp.pad(aux, ((0, 0), (0, 0), (0, H_t - H), (0, W_p - W)))  # zeros at pad rows/cols
    aux_main = aux.reshape(Na, 2, H_t * W_p)
    auxrows = jnp.pad(aux, ((0, 0), (0, 0), (1, 1), (0, 0)))
    aidx = (jnp.arange(T)[:, None] * TH + jnp.asarray([0, TH + 1])[None, :]).reshape(-1)
    aux_halo = (jnp.take(auxrows, aidx, axis=2)
                .reshape(Na, 2, T, 2 * W_p).transpose(0, 2, 1, 3))    # (Na, T, 2, 2*W_p)

    # --- weights: HWIO -> fused-K (Cout_p, 9*C_p), tap order (ky, kx, cin) --------------------
    w1 = jnp.asarray(params["w1"], jnp.float32)
    w1 = jnp.pad(w1, ((0, 0), (0, 0), (0, Cin_p - Cin), (0, Cout_p - Cout)))
    w1 = w1.transpose(3, 0, 1, 2).reshape(Cout_p, 9 * Cin_p).astype(matmul_dtype)
    w2 = jnp.asarray(params["w2"], jnp.float32)
    w2 = jnp.pad(w2, ((0, 0), (0, 0), (0, Cout_p - Cout), (0, Cout_p - Cout)))
    w2 = w2.transpose(3, 0, 1, 2).reshape(Cout_p, 9 * Cout_p).astype(matmul_dtype)
    b1 = jnp.pad(jnp.asarray(params["b1"], jnp.float32), (0, Cout_p - Cout)).reshape(Cout_p, 1)
    b2 = jnp.pad(jnp.asarray(params["b2"], jnp.float32), (0, Cout_p - Cout)).reshape(Cout_p, 1)

    if Na == 1:
        aux_map = lambda n, t: (0, 0, t)
        auxh_map = lambda n, t: (0, t, 0, 0)
    else:
        aux_map = lambda n, t: (n, 0, t)
        auxh_map = lambda n, t: (n, t, 0, 0)

    in_specs = [
        pl.BlockSpec((None, Cin_p, TH * W_p), lambda n, t: (n, 0, t)),          # x band
        pl.BlockSpec((None, None, Cin_p, 4 * W_p), lambda n, t: (n, t, 0, 0)),  # x 2-row halos
        pl.BlockSpec((None, 2, TH * W_p), aux_map),                             # ratio | update
        pl.BlockSpec((None, None, 2, 2 * W_p), auxh_map),                       # their halos
        pl.BlockSpec((Cout_p, 9 * Cin_p), lambda n, t: (0, 0)),                 # w1 (invariant)
        pl.BlockSpec((Cout_p, 1), lambda n, t: (0, 0)),                         # b1
        pl.BlockSpec((Cout_p, 9 * Cout_p), lambda n, t: (0, 0)),                # w2
        pl.BlockSpec((Cout_p, 1), lambda n, t: (0, 0)),                         # b2
    ]
    out_spec = pl.BlockSpec((None, Cout_p, TH * W_p), lambda n, t: (n, 0, t))

    flops = 2 * N * H_t * W_p * 9 * (Cin_p * Cout_p + Cout_p * Cout_p)
    bytes_accessed = (x_main.size * mm_bytes + x_halo.size * mm_bytes
                      + aux_main.size * 4 + aux_halo.size * 4
                      + (w1.size + w2.size) * mm_bytes + (b1.size + b2.size) * 4
                      + N * Cout_p * H_t * W_p * out_bytes)

    kernel = functools.partial(_unet_conv2_part_kernel, W=W, W_p=W_p, TH=TH,
                               matmul_dtype=matmul_dtype)

    out_flat = pl.pallas_call(
        kernel,
        out_shape=jax.ShapeDtypeStruct((N, Cout_p, H_t * W_p), out_dtype),
        grid_spec=pltpu.PrefetchScalarGridSpec(
            num_scalar_prefetch=0,
            grid=(N, T),
            in_specs=in_specs,
            out_specs=out_spec,
        ),
        compiler_params=pltpu.CompilerParams(
            dimension_semantics=("parallel", "parallel"),
            vmem_limit_bytes=vmem_limit,
        ),
        cost_estimate=pl.CostEstimate(flops=int(flops), transcendentals=0,
                                      bytes_accessed=int(bytes_accessed)),
    )(x_main, x_halo, aux_main, aux_halo, w1, b1, w2, b2)

    out = out_flat.reshape(N, Cout_p, H_t, W_p)[:, :Cout, :H, :W]
    return out                                                       # NCHW — no transpose


def make_params(key, in_size, out_size):
    k1, k2, k3, k4 = jax.random.split(key, 4)
    w1 = jax.random.normal(k1, (3, 3, in_size, out_size), jnp.float32) / jnp.sqrt(9.0 * in_size)
    b1 = jax.random.normal(k2, (out_size,), jnp.float32) * 0.1
    w2 = jax.random.normal(k3, (3, 3, out_size, out_size), jnp.float32) / jnp.sqrt(9.0 * out_size)
    b2 = jax.random.normal(k4, (out_size,), jnp.float32) * 0.1
    return {"w1": w1, "b1": b1, "w2": w2, "b2": b2}


def _ref_forward(x_nchw, params, mask_nchw=None):
    """Pure-JAX reference of the same forward (for correctness checking)."""
    x = jnp.transpose(x_nchw, (0, 2, 3, 1)).astype(jnp.float32)
    N, H, W, Cin = x.shape
    Cout = params["w1"].shape[-1]
    mask = (jnp.ones((N, H, W, 1), jnp.float32) if mask_nchw is None
            else jnp.transpose(mask_nchw, (0, 2, 3, 1)).astype(jnp.float32))
    dn_m = lax.conv_dimension_numbers(mask.shape, (3, 3, 1, 1), ("NHWC", "HWIO", "NHWC"))
    dn_x = lax.conv_dimension_numbers(x.shape, params["w1"].shape, ("NHWC", "HWIO", "NHWC"))
    cnt = lax.conv_general_dilated(mask, jnp.ones((3, 3, 1, 1), jnp.float32), (1, 1), "SAME",
                                   dimension_numbers=dn_m, precision=lax.Precision.HIGHEST)
    raw = lax.conv_general_dilated(x * mask, params["w1"], (1, 1), "SAME",
                                   dimension_numbers=dn_x, precision=lax.Precision.HIGHEST)
    um = jnp.clip(cnt, 0.0, 1.0)
    ratio = (SLIDE_WINSIZE / (cnt + 1e-8)) * um
    out1 = (raw * ratio + params["b1"].reshape(1, 1, 1, Cout)) * um
    h = jnp.maximum(out1, 0.0)
    dn_h = lax.conv_dimension_numbers(h.shape, params["w2"].shape, ("NHWC", "HWIO", "NHWC"))
    out2 = lax.conv_general_dilated(h, params["w2"], (1, 1), "SAME",
                                    dimension_numbers=dn_h, precision=lax.Precision.HIGHEST)
    out2 = jnp.maximum(out2 + params["b2"].reshape(1, 1, 1, Cout), 0.0)
    return jnp.transpose(out2, (0, 3, 1, 2))


if __name__ == "__main__":
    key = jax.random.PRNGKey(0)
    kx, kp, km = jax.random.split(key, 3)
    in_size, out_size = 4, 8
    N, H, W = 2, 12, 24        # non-square, W not a power of two (lane-pads to 128)

    x = jax.random.normal(kx, (N, in_size, H, W), jnp.float32)     # NCHW, like PyTorch
    params = make_params(kp, in_size, out_size)
    ref = _ref_forward(x, params)

    # 1) f32 MXU operands, forced 2-band row tiling (exercises halo + row padding), tight tol.
    out = jax.block_until_ready(
        unet_conv2_part_forward(x, params, matmul_dtype=jnp.float32, row_tile=8))
    assert out.shape == (N, out_size, H, W), out.shape
    if not bool(jnp.allclose(out, ref, atol=2e-4, rtol=2e-4)):
        raise AssertionError(
            f"mask=None (f32) mismatch, max abs err={float(jnp.max(jnp.abs(out - ref)))}")

    # 2) explicit binary mask (PartialConv2d mask path), f32, auto (single-band) tiling.
    mask = (jax.random.uniform(km, (N, 1, H, W)) > 0.3).astype(jnp.float32)
    out_m = jax.block_until_ready(
        unet_conv2_part_forward(x, params, mask, matmul_dtype=jnp.float32))
    ref_m = _ref_forward(x, params, mask)
    if not bool(jnp.allclose(out_m, ref_m, atol=2e-4, rtol=2e-4)):
        raise AssertionError(
            f"masked (f32) mismatch, max abs err={float(jnp.max(jnp.abs(out_m - ref_m)))}")

    # 3) default bf16 MXU operands + bf16 im2col (v6e/v7x fast path), 3-band tiling.
    out_bf = jax.block_until_ready(unet_conv2_part_forward(x, params, row_tile=4))
    if not bool(jnp.allclose(out_bf, ref, atol=7.5e-2, rtol=7.5e-2)):
        raise AssertionError(
            f"bf16 mismatch, max abs err={float(jnp.max(jnp.abs(out_bf - ref)))}")

    print("KERNEL_OK")
</pallas_src>

<mosaic_0001>
module attributes {stable_mosaic.version = 11 : i64} {
  func.func @_unet_conv2_part_kernel(%arg0: i32, %arg1: i32, %arg2: memref<1x8x1024xf32, #tpu.memory_space<vmem>>, %arg3: memref<1x1x8x512xf32, #tpu.memory_space<vmem>>, %arg4: memref<1x2x1024xf32, #tpu.memory_space<vmem>>, %arg5: memref<1x1x2x256xf32, #tpu.memory_space<vmem>>, %arg6: memref<8x72xf32, #tpu.memory_space<vmem>>, %arg7: memref<8x1xf32, #tpu.memory_space<vmem>>, %arg8: memref<8x72xf32, #tpu.memory_space<vmem>>, %arg9: memref<8x1xf32, #tpu.memory_space<vmem>>, %arg10: memref<1x8x1024xf32, #tpu.memory_space<vmem>>) attributes {dimension_semantics = [#tpu.dimension_semantics<parallel>, #tpu.dimension_semantics<parallel>], iteration_bounds = array<i64: 2, 2>, scalar_prefetch = 0 : i64, scratch_operands = 0 : i64, tpu.core_type = #tpu.core_type<tc>, window_params = [{transform_indices = @transform_0, window_bounds = array<i64: 1, 8, 1024>}, {transform_indices = @transform_1, window_bounds = array<i64: 1, 1, 8, 512>}, {transform_indices = @transform_2, window_bounds = array<i64: 1, 2, 1024>}, {transform_indices = @transform_3, window_bounds = array<i64: 1, 1, 2, 256>}, {pipeline_mode = #tpu.pipeline_mode<synchronous>, transform_indices = @transform_4, window_bounds = array<i64: 8, 72>}, {pipeline_mode = #tpu.pipeline_mode<synchronous>, transform_indices = @transform_5, window_bounds = array<i64: 8, 1>}, {pipeline_mode = #tpu.pipeline_mode<synchronous>, transform_indices = @transform_6, window_bounds = array<i64: 8, 72>}, {pipeline_mode = #tpu.pipeline_mode<synchronous>, transform_indices = @transform_7, window_bounds = array<i64: 8, 1>}, {transform_indices = @transform_8, window_bounds = array<i64: 1, 8, 1024>}]} {
    %0 = tpu.iota {dimensions = array<i32: 1>} : vector<1x1536xi32>
    %c128_i32 = arith.constant 128 : i32
    %c0_i32 = arith.constant 0 : i32
    %1 = arith.cmpi eq, %c128_i32, %c0_i32 : i32
    %c1_i32 = arith.constant 1 : i32
    %2 = arith.select %1, %c1_i32, %c128_i32 : i32
    %3 = vector.broadcast %2 : i32 to vector<1x1536xi32>
    %4 = arith.remsi %0, %3 : vector<1x1536xi32>
    %c0_i32_0 = arith.constant 0 : i32
    %5 = vector.broadcast %c0_i32_0 : i32 to vector<1x1536xi32>
    %6 = arith.cmpi ne, %4, %5 : vector<1x1536xi32>
    %c0_i32_1 = arith.constant 0 : i32
    %7 = vector.broadcast %c0_i32_1 : i32 to vector<1x1536xi32>
    %8 = arith.cmpi slt, %4, %7 : vector<1x1536xi32>
    %c0_i32_2 = arith.constant 0 : i32
    %9 = arith.cmpi slt, %2, %c0_i32_2 : i32
    %10 = vector.broadcast %9 : i1 to vector<1x1536xi1>
    %11 = vector.broadcast %10 : vector<1x1536xi1> to vector<1x1536xi1>
    %12 = arith.xori %8, %11 : vector<1x1536xi1>
    %13 = arith.andi %12, %6 : vector<1x1536xi1>
    %14 = vector.broadcast %2 : i32 to vector<1x1536xi32>
    %15 = arith.addi %4, %14 : vector<1x1536xi32>
    %16 = arith.select %13, %15, %4 : vector<1x1536xi1>, vector<1x1536xi32>
    %c1_i32_3 = arith.constant 1 : i32
    %17 = vector.broadcast %c1_i32_3 : i32 to vector<1x1536xi32>
    %18 = arith.cmpi sge, %16, %17 : vector<1x1536xi32>
    %c22_i32 = arith.constant 22 : i32
    %19 = vector.broadcast %c22_i32 : i32 to vector<1x1536xi32>
    %20 = arith.cmpi sle, %16, %19 : vector<1x1536xi32>
    %c0 = arith.constant 0 : index
    %c0_4 = arith.constant 0 : index
    %c0_5 = arith.constant 0 : index
    %c0_6 = arith.constant 0 : index
    %21 = vector.load %arg3[%c0, %c0_4, %c0_5, %c0_6] : memref<1x1x8x512xf32, #tpu.memory_space<vmem>>, vector<1x1x8x512xf32>
    %22 = vector.shape_cast %21 : vector<1x1x8x512xf32> to vector<8x512xf32>
    %23 = vector.extract_strided_slice %22 {offsets = [0, 0], sizes = [8, 256], strides = [1, 1]} : vector<8x512xf32> to vector<8x256xf32>
    %c0_7 = arith.constant 0 : index
    %c0_8 = arith.constant 0 : index
    %c0_9 = arith.constant 0 : index
    %24 = vector.load %arg2[%c0_7, %c0_8, %c0_9] : memref<1x8x1024xf32, #tpu.memory_space<vmem>>, vector<1x8x1024xf32>
    %25 = vector.shape_cast %24 : vector<1x8x1024xf32> to vector<8x1024xf32>
    %26 = vector.extract_strided_slice %22 {offsets = [0, 256], sizes = [8, 256], strides = [1, 1]} : vector<8x512xf32> to vector<8x256xf32>
    %27 = tpu.concatenate %23, %25, %26 in 1 : vector<8x256xf32>, vector<8x1024xf32>, vector<8x256xf32> -> vector<8x1536xf32>
    %c1_i32_10 = arith.constant 1 : i32
    %28 = tpu.dynamic_rotate %27 by %c1_i32_10 dim 1 : vector<8x1536xf32>, i32 -> vector<8x1536xf32>
    %c0_i32_11 = arith.constant 0 : i32
    %29 = arith.sitofp %c0_i32_11 : i32 to f32
    %30 = vector.shape_cast %18 : vector<1x1536xi1> to vector<1x1536xi1>
    %31 = vector.broadcast %30 : vector<1x1536xi1> to vector<8x1536xi1>
    %32 = vector.broadcast %29 : f32 to vector<8x1536xf32>
    %33 = arith.select %31, %28, %32 : vector<8x1536xi1>, vector<8x1536xf32>
    %c1535_i32 = arith.constant 1535 : i32
    %34 = tpu.dynamic_rotate %27 by %c1535_i32 dim 1 : vector<8x1536xf32>, i32 -> vector<8x1536xf32>
    %c0_i32_12 = arith.constant 0 : i32
    %35 = arith.sitofp %c0_i32_12 : i32 to f32
    %36 = vector.shape_cast %20 : vector<1x1536xi1> to vector<1x1536xi1>
    %37 = vector.broadcast %36 : vector<1x1536xi1> to vector<8x1536xi1>
    %38 = vector.broadcast %35 : f32 to vector<8x1536xf32>
    %39 = arith.select %37, %34, %38 : vector<8x1536xi1>, vector<8x1536xf32>
    %40 = vector.extract_strided_slice %33 {offsets = [0, 0], sizes = [8, 1280], strides = [1, 1]} : vector<8x1536xf32> to vector<8x1280xf32>
    %41 = vector.extract_strided_slice %27 {offsets = [0, 0], sizes = [8, 1280], strides = [1, 1]} : vector<8x1536xf32> to vector<8x1280xf32>
    %42 = vector.extract_strided_slice %39 {offsets = [0, 0], sizes = [8, 1280], strides = [1, 1]} : vector<8x1536xf32> to vector<8x1280xf32>
    %43 = vector.extract_strided_slice %33 {offsets = [0, 128], sizes = [8, 1280], strides = [1, 1]} : vector<8x1536xf32> to vector<8x1280xf32>
    %44 = vector.extract_strided_slice %27 {offsets = [0, 128], sizes = [8, 1280], strides = [1, 1]} : vector<8x1536xf32> to vector<8x1280xf32>
    %45 = vector.extract_strided_slice %39 {offsets = [0, 128], sizes = [8, 1280], strides = [1, 1]} : vector<8x1536xf32> to vector<8x1280xf32>
    %46 = vector.extract_strided_slice %33 {offsets = [0, 256], sizes = [8, 1280], strides = [1, 1]} : vector<8x1536xf32> to vector<8x1280xf32>
    %47 = vector.extract_strided_slice %27 {offsets = [0, 256], sizes = [8, 1280], strides = [1, 1]} : vector<8x1536xf32> to vector<8x1280xf32>
    %48 = vector.extract_strided_slice %39 {offsets = [0, 256], sizes = [8, 1280], strides = [1, 1]} : vector<8x1536xf32> to vector<8x1280xf32>
    %49 = tpu.concatenate %40, %41, %42, %43, %44, %45, %46, %47, %48 in 0 : vector<8x1280xf32>, vector<8x1280xf32>, vector<8x1280xf32>, vector<8x1280xf32>, vector<8x1280xf32>, vector<8x1280xf32>, vector<8x1280xf32>, vector<8x1280xf32>, vector<8x1280xf32> -> vector<72x1280xf32>
    %c0_13 = arith.constant 0 : index
    %c0_14 = arith.constant 0 : index
    %50 = vector.load %arg6[%c0_13, %c0_14] : memref<8x72xf32, #tpu.memory_space<vmem>>, vector<8x72xf32>
    %cst = arith.constant dense<0.000000e+00> : vector<8x1280xf32>
    %51 = tpu.matmul %50, %49, %cst {dimension_numbers = #tpu.dot_dimension_numbers<[1], [0], [0], [1], [0, 0, 1, 1], [], []>} : vector<8x72xf32>, vector<72x1280xf32>, vector<8x1280xf32> -> vector<8x1280xf32>
    %c0_15 = arith.constant 0 : index
    %c0_16 = arith.constant 0 : index
    %c0_17 = arith.constant 0 : index
    %c0_18 = arith.constant 0 : index
    %52 = vector.load %arg5[%c0_15, %c0_16, %c0_17, %c0_18] : memref<1x1x2x256xf32, #tpu.memory_space<vmem>>, vector<1x1x2x256xf32>
    %53 = vector.shape_cast %52 : vector<1x1x2x256xf32> to vector<2x256xf32>
    %54 = vector.extract_strided_slice %53 {offsets = [0, 0], sizes = [2, 128], strides = [1, 1]} : vector<2x256xf32> to vector<2x128xf32>
    %c0_19 = arith.constant 0 : index
    %c0_20 = arith.constant 0 : index
    %c0_21 = arith.constant 0 : index
    %55 = vector.load %arg4[%c0_19, %c0_20, %c0_21] : memref<1x2x1024xf32, #tpu.memory_space<vmem>>, vector<1x2x1024xf32>
    %56 = vector.shape_cast %55 : vector<1x2x1024xf32> to vector<2x1024xf32>
    %57 = vector.extract_strided_slice %53 {offsets = [0, 128], sizes = [2, 128], strides = [1, 1]} : vector<2x256xf32> to vector<2x128xf32>
    %58 = tpu.concatenate %54, %56, %57 in 1 : vector<2x128xf32>, vector<2x1024xf32>, vector<2x128xf32> -> vector<2x1280xf32>
    %59 = vector.extract_strided_slice %58 {offsets = [0, 0], sizes = [1, 1280], strides = [1, 1]} : vector<2x1280xf32> to vector<1x1280xf32>
    %60 = vector.extract_strided_slice %58 {offsets = [1, 0], sizes = [1, 1280], strides = [1, 1]} : vector<2x1280xf32> to vector<1x1280xf32>
    %61 = vector.broadcast %59 : vector<1x1280xf32> to vector<8x1280xf32>
    %62 = arith.mulf %51, %61 : vector<8x1280xf32>
    %c0_22 = arith.constant 0 : index
    %c0_23 = arith.constant 0 : index
    %63 = vector.load %arg7[%c0_22, %c0_23] : memref<8x1xf32, #tpu.memory_space<vmem>>, vector<8x1xf32>
    %64 = vector.broadcast %63 : vector<8x1xf32> to vector<8x1280xf32>
    %65 = arith.addf %62, %64 : vector<8x1280xf32>
    %66 = vector.broadcast %60 : vector<1x1280xf32> to vector<8x1280xf32>
    %67 = arith.mulf %65, %66 : vector<8x1280xf32>
    %cst_24 = arith.constant 0.000000e+00 : f32
    %68 = vector.broadcast %cst_24 : f32 to vector<8x1280xf32>
    %69 = arith.maximumf %67, %68 : vector<8x1280xf32>
    %70 = vector.extract_strided_slice %18 {offsets = [0, 0], sizes = [1, 1280], strides = [1, 1]} : vector<1x1536xi1> to vector<1x1280xi1>
    %c1_i32_25 = arith.constant 1 : i32
    %71 = tpu.dynamic_rotate %69 by %c1_i32_25 dim 1 : vector<8x1280xf32>, i32 -> vector<8x1280xf32>
    %c0_i32_26 = arith.constant 0 : i32
    %72 = arith.sitofp %c0_i32_26 : i32 to f32
    %73 = vector.shape_cast %70 : vector<1x1280xi1> to vector<1x1280xi1>
    %74 = vector.broadcast %73 : vector<1x1280xi1> to vector<8x1280xi1>
    %75 = vector.broadcast %72 : f32 to vector<8x1280xf32>
    %76 = arith.select %74, %71, %75 : vector<8x1280xi1>, vector<8x1280xf32>
    %77 = vector.extract_strided_slice %20 {offsets = [0, 0], sizes = [1, 1280], strides = [1, 1]} : vector<1x1536xi1> to vector<1x1280xi1>
    %c1279_i32 = arith.constant 1279 : i32
    %78 = tpu.dynamic_rotate %69 by %c1279_i32 dim 1 : vector<8x1280xf32>, i32 -> vector<8x1280xf32>
    %c0_i32_27 = arith.constant 0 : i32
    %79 = arith.sitofp %c0_i32_27 : i32 to f32
    %80 = vector.shape_cast %77 : vector<1x1280xi1> to vector<1x1280xi1>
    %81 = vector.broadcast %80 : vector<1x1280xi1> to vector<8x1280xi1>
    %82 = vector.broadcast %79 : f32 to vector<8x1280xf32>
    %83 = arith.select %81, %78, %82 : vector<8x1280xi1>, vector<8x1280xf32>
    %84 = vector.extract_strided_slice %76 {offsets = [0, 0], sizes = [8, 1024], strides = [1, 1]} : vector<8x1280xf32> to vector<8x1024xf32>
    %85 = vector.extract_strided_slice %69 {offsets = [0, 0], sizes = [8, 1024], strides = [1, 1]} : vector<8x1280xf32> to vector<8x1024xf32>
    %86 = vector.extract_strided_slice %83 {offsets = [0, 0], sizes = [8, 1024], strides = [1, 1]} : vector<8x1280xf32> to vector<8x1024xf32>
    %87 = vector.extract_strided_slice %76 {offsets = [0, 128], sizes = [8, 1024], strides = [1, 1]} : vector<8x1280xf32> to vector<8x1024xf32>
    %88 = vector.extract_strided_slice %69 {offsets = [0, 128], sizes = [8, 1024], strides = [1, 1]} : vector<8x1280xf32> to vector<8x1024xf32>
    %89 = vector.extract_strided_slice %83 {offsets = [0, 128], sizes = [8, 1024], strides = [1, 1]} : vector<8x1280xf32> to vector<8x1024xf32>
    %90 = vector.extract_strided_slice %76 {offsets = [0, 256], sizes = [8, 1024], strides = [1, 1]} : vector<8x1280xf32> to vector<8x1024xf32>
    %91 = vector.extract_strided_slice %69 {offsets = [0, 256], sizes = [8, 1024], strides = [1, 1]} : vector<8x1280xf32> to vector<8x1024xf32>
    %92 = vector.extract_strided_slice %83 {offsets = [0, 256], sizes = [8, 1024], strides = [1, 1]} : vector<8x1280xf32> to vector<8x1024xf32>
    %93 = tpu.concatenate %84, %85, %86, %87, %88, %89, %90, %91, %92 in 0 : vector<8x1024xf32>, vector<8x1024xf32>, vector<8x1024xf32>, vector<8x1024xf32>, vector<8x1024xf32>, vector<8x1024xf32>, vector<8x1024xf32>, vector<8x1024xf32>, vector<8x1024xf32> -> vector<72x1024xf32>
    %c0_28 = arith.constant 0 : index
    %c0_29 = arith.constant 0 : index
    %94 = vector.load %arg8[%c0_28, %c0_29] : memref<8x72xf32, #tpu.memory_space<vmem>>, vector<8x72xf32>
    %cst_30 = arith.constant dense<0.000000e+00> : vector<8x1024xf32>
    %95 = tpu.matmul %94, %93, %cst_30 {dimension_numbers = #tpu.dot_dimension_numbers<[1], [0], [0], [1], [0, 0, 1, 1], [], []>} : vector<8x72xf32>, vector<72x1024xf32>, vector<8x1024xf32> -> vector<8x1024xf32>
    %c0_31 = arith.constant 0 : index
    %c0_32 = arith.constant 0 : index
    %96 = vector.load %arg9[%c0_31, %c0_32] : memref<8x1xf32, #tpu.memory_space<vmem>>, vector<8x1xf32>
    %97 = vector.broadcast %96 : vector<8x1xf32> to vector<8x1024xf32>
    %98 = arith.addf %95, %97 : vector<8x1024xf32>
    %cst_33 = arith.constant 0.000000e+00 : f32
    %99 = vector.broadcast %cst_33 : f32 to vector<8x1024xf32>
    %100 = arith.maximumf %98, %99 : vector<8x1024xf32>
    %c0_34 = arith.constant 0 : index
    %c0_35 = arith.constant 0 : index
    %c0_36 = arith.constant 0 : index
    %101 = vector.load %arg10[%c0_34, %c0_35, %c0_36] : memref<1x8x1024xf32, #tpu.memory_space<vmem>>, vector<1x8x1024xf32>
    %102 = vector.shape_cast %101 : vector<1x8x1024xf32> to vector<8x1024xf32>
    %103 = vector.shape_cast %100 : vector<8x1024xf32> to vector<1x8x1024xf32>
    tpu.vector_store %arg10[%c0_34, %c0_35, %c0_36], %103 {strides = array<i32>} : memref<1x8x1024xf32, #tpu.memory_space<vmem>>, vector<1x8x1024xf32>,
    return
  }
  func.func @transform_0(%arg0: i32, %arg1: i32) -> (i32, i32, i32) {
    %c0_i32 = arith.constant 0 : i32
    %c0_i32_0 = arith.constant 0 : i32
    return %arg0, %c0_i32, %arg1 : i32, i32, i32
  }
  func.func @transform_1(%arg0: i32, %arg1: i32) -> (i32, i32, i32, i32) {
    %c0_i32 = arith.constant 0 : i32
    %c0_i32_0 = arith.constant 0 : i32
    %c0_i32_1 = arith.constant 0 : i32
    return %arg0, %arg1, %c0_i32, %c0_i32_0 : i32, i32, i32, i32
  }
  func.func @transform_2(%arg0: i32, %arg1: i32) -> (i32, i32, i32) {
    %c0_i32 = arith.constant 0 : i32
    %c0_i32_0 = arith.constant 0 : i32
    %c0_i32_1 = arith.constant 0 : i32
    return %c0_i32, %c0_i32_0, %arg1 : i32, i32, i32
  }
  func.func @transform_3(%arg0: i32, %arg1: i32) -> (i32, i32, i32, i32) {
    %c0_i32 = arith.constant 0 : i32
    %c0_i32_0 = arith.constant 0 : i32
    %c0_i32_1 = arith.constant 0 : i32
    %c0_i32_2 = arith.constant 0 : i32
    return %c0_i32, %arg1, %c0_i32_0, %c0_i32_1 : i32, i32, i32, i32
  }
  func.func @transform_4(%arg0: i32, %arg1: i32) -> (i32, i32) {
    %c0_i32 = arith.constant 0 : i32
    %c0_i32_0 = arith.constant 0 : i32
    %c0_i32_1 = arith.constant 0 : i32
    return %c0_i32, %c0_i32_0 : i32, i32
  }
  func.func @transform_5(%arg0: i32, %arg1: i32) -> (i32, i32) {
    %c0_i32 = arith.constant 0 : i32
    %c0_i32_0 = arith.constant 0 : i32
    %c0_i32_1 = arith.constant 0 : i32
    return %c0_i32, %c0_i32_0 : i32, i32
  }
  func.func @transform_6(%arg0: i32, %arg1: i32) -> (i32, i32) {
    %c0_i32 = arith.constant 0 : i32
    %c0_i32_0 = arith.constant 0 : i32
    %c0_i32_1 = arith.constant 0 : i32
    return %c0_i32, %c0_i32_0 : i32, i32
  }
  func.func @transform_7(%arg0: i32, %arg1: i32) -> (i32, i32) {
    %c0_i32 = arith.constant 0 : i32
    %c0_i32_0 = arith.constant 0 : i32
    %c0_i32_1 = arith.constant 0 : i32
    return %c0_i32, %c0_i32_0 : i32, i32
  }
  func.func @transform_8(%arg0: i32, %arg1: i32) -> (i32, i32, i32) {
    %c0_i32 = arith.constant 0 : i32
    %c0_i32_0 = arith.constant 0 : i32
    return %arg0, %c0_i32, %arg1 : i32, i32, i32
  }
}

</mosaic_0001>

<bundles_post_ra>
// kernel: tpu_custom_call.1
= control target key start
LH: loop header
LB: loop body
LE: loop exit
PB: predicated region body
PF: predicated region fallthrough
CT: control target
= control target key end

     0   :  { %s3447_s0 = inlined_call_operand.hbm [shape: f32[2,8,2048], index: 0, kind: input, shape index: {}]   ;;  %s3448_s1 = inlined_call_operand.hbm [shape: f32[2,2,8,512], index: 1, kind: input, shape index: {}]   ;;  %s3449_s2 = inlined_call_operand.hbm [shape: f32[1,2,2048], index: 2, kind: input, shape index: {}]   ;;  %s3450_s3 = inlined_call_operand.vmem [shape: f32[1,2,2,256], index: 3, kind: input, shape index: {}]   ;;  %s3451_s4 = inlined_call_operand.vmem [shape: f32[8,72], index: 4, kind: input, shape index: {}]   ;;  %s3452_s5 = inlined_call_operand.vmem [shape: f32[8,1], index: 5, kind: input, shape index: {}]   ;;  %s3453_s6 = inlined_call_operand.vmem [shape: f32[8,72], index: 6, kind: input, shape index: {}]   ;;  %s3454_s7 = inlined_call_operand.vmem [shape: f32[8,1], index: 7, kind: input, shape index: {}]   ;;  %s3455_s8 = inlined_call_operand.hbm [shape: f32[2,8,2048], index: 8, kind: output, shape index: {}]  }
   0x1   :  { %3494 = sst [smem:[#allocation23_spill]] %s3448_s1 }
   0x2   :  { %3495 = sst [smem:[#allocation24_spill]] %s3450_s3 }
   0x3   :  { %3496 = sst [smem:[#allocation25_spill]] %s3451_s4 }
   0x4   :  { %3497 = sst [smem:[#allocation26_spill]] %s3453_s6 }
   0x5   :  { %3498 = sst [smem:[#allocation27_spill]] %s3454_s7 }
   0x6   :  { %3499 = sst [smem:[#allocation28_spill]] %s3455_s8 }
   0x7   :  { %13 = vsyncpa [#allocation3], 0 }
   0x8   :  { %15 = vsyncpa [#allocation3 + $0x1], 0 }
   0x9   :  { %16 = vsyncpa [#allocation6], 0 }
   0xa   :  { %18 = vsyncpa [#allocation6 + $0x1], 0 }
   0xb   :  { %19 = vsyncpa [#allocation4], 0 }
   0xc   :  { %21 = vsyncpa [#allocation4 + $0x1], 0  ;;  %s2409_s27 = smov 0   ;;  %s2411_s28 = smov 0  }
   0xd   :  { %s2413_s29 = smov 0   ;;  %s2415_s30 = smov 0  }
   0xe   :  { %s2417_s9 = smov 0   ;;  %s2419_s10 = smov 0  }
   0xf   :  { %s2421_s11 = smov 0   ;;  %s2423_s12 = smov 0  }
  0x10   :  { %s2425_s13 = smov 0   ;;  %s2427_s14 = smov 0  }
  0x11   :  { %s2429_s15 = smov 0  }
  0x12 LB: > { %3500 = sst [smem:[#allocation13_spill]] %s2325_s30  ;;  %s2465_s16 = sadd.s32 4294967295, %s2353_s15   ;;  %s2353_s15 = sphi %s2429_s15, %s27_s15   ;;  %s2349_s14 = sphi %s2427_s14, %s3618_s14   ;;  %s2345_s13 = sphi %s2425_s13, %s3626_s13   ;;  %s2341_s12 = sphi %s2423_s12, %s3616_s12   ;;  %s2337_s11 = sphi %s2421_s11, %s3625_s11   ;;  %s2333_s10 = sphi %s2419_s10, %s3624_s10   ;;  %s2329_s9 = sphi %s2417_s9, %s3623_s9   ;;  %s2325_s30 = sphi %s2415_s30, %s3622_s30   ;;  %s2321_s29 = sphi %s2413_s29, %s3621_s29   ;;  %s2317_s28 = sphi %s2411_s28, %s3620_s28   ;;  %s2313_s27 = sphi %s2409_s27, %s3619_s27  }
  0x13   : > { %3501 = sst [smem:[#allocation14_spill]] %s2333_s10  ;;  %s1875_s17 = sadd.s32 4294967294, %s2353_s15  }
  0x14   : > { %3502 = sst [smem:[#allocation15_spill]] %s2337_s11  ;;  %s36_s18 = sadd.s32 1, %s2345_s13 }
  0x15   : > { %3503 = sst [smem:[#allocation16_spill]] %s2341_s12  ;;  %s39_s19 = sadd.s32 1, %s2349_s14 }
  0x16   : > { %3504 = sst [smem:[#allocation17_spill]] %s2349_s14  ;;  %p37_p0 = scmp.ge.s32.totalorder %s36_s18, 2 }
  0x17   : > { %s48_s20 = sadd.s32 1, %s2333_s10  ;;  %p55_p1 = scmp.ne.s32.totalorder %s2333_s10, %s2329_s9 }
  0x18   : > { %p3466_p2 = scmp.eq.s32.totalorder %s2353_s15, 0  ;;  %s3628_s18 = smov (%p37_p0, %s36_s18), 0 }
  0x19   : > { %3505 = sst [smem:[#allocation18_spill]] %s3628_s18  ;;  %s3630_s19 = smov (!%p37_p0, %s39_s19), %s2349_s14 }
  0x1a   : > { %s2479_s21 = ssub.s32 %s2345_s13, %s3628_s18  ;;  %p2486_p3 = por %p3466_p2, %p55_p1 }
  0x1b   : > { %p41_p4 = scmp.ge.s32.totalorder %s3630_s19, 2  ;;  %p61_p5 = scmp.ne.s32.totalorder %s2329_s9, %s2325_s30 }
  0x1c   : > { %p3465_p6 = scmp.eq.s32.totalorder %s2465_s16, 0  ;;  %p251_p9 = scmp.eq.s32.totalorder %s2465_s16, 3 }
  0x1d   : > { %s3632_s19 = smov (%p41_p4, %s3630_s19), 0  ;;  %p257_p10 = scmp.eq.s32.totalorder %s1875_s17, 3 }
  0x1e   : > { %3507 = sst [smem:[#allocation19_spill]] %s3632_s19  ;;  %p2498_p8 = por %p3465_p6, %p61_p5 }
  0x1f   : > { %s43_s24 = ssub.s32 %s2349_s14, %s3632_s19  ;;  %p2509_p11 = por %p251_p9, %p55_p1 }
  0x20   : > { %s45_s25 = sor.u32 %s2479_s21, %s43_s24  ;;  %p2513_p13 = por %p257_p10, %p61_p5 }
  0x21   : > { %s3509_s26 = scalar_select %p2509_p11, 1, 0 }
  0x22   : > { %p46_p12 = scmp.eq.s32.totalorder %s45_s25, 0  ;;  %p3464_p0 = scmp.lt.s32.totalorder %s2353_s15, 4 }
  0x23   : > { %3510 = sst [smem:[#allocation20_spill]] %s3509_s26  ;;  %s2522_s8 = sand.u32 1, %s2333_s10  }
  0x24   : > { %s3511_s18 = scalar_select %p2513_p13, 1, 0 }
  0x25   : > { %s2519_s30 = scalar_select %p46_p12, %s2333_s10, %s48_s20  }
  0x26   : > { %3512 = sst [smem:[#allocation21_spill]] %s3511_s18  ;;  %p2528_p4 = pnand %p3464_p0, %p2486_p3 }
  0x27   : > { %3513 = sst [smem:[#allocation22_spill]] %s2519_s30  ;;  %s310_s24 = sand.u32 1, %s2353_s15  }
  0x28   : > { %s1882_s25 = sshll.u32 %s2522_s8, 5  ;;  %s1883_s19 = sshll.u32 %s2345_s13, 2 }
  0x29   : > { %s1884_s26 = sshll.u32 %s2349_s14, 3  ;;  %s314_s18 = scalar_lea.vmem [#allocation5], %s1882_s25 }
  0x2a   : > { %s324_s12 = sshll.u32 %s314_s18, 4  ;;  %s320_s6 = sadd.s32 %s1884_s26, %s1883_s19  ;;  %s325_s12 = int_to_ptr.vmem [resolvable:$true] %s324_s12 }
  0x2b   : > { %s1885_s20 = sshll.u32 %s320_s6, 7  ;;  %p1889_p1 = scmp.ge.s32.totalorder %s2353_s15, 1 }
  0x2c   : > { %s3515_s1 = sld [smem:[#allocation23_spill]]  ;;  %p356_p3 = scmp.lt.s32.totalorder %s2353_s15, 5 }
  0x2d   : > { %s2541_s7 = scalar_lea.sflag [#allocation6], %s310_s24  ;;  %p2143_p5 = pneg %p2528_p4 }
  0x2e   : > { %s2154_s3 = scalar_lea.vmem %s325_s12, 512  ;;  %s2355_s18 = smov [#allocation5]  }
  0x2f   : > { %p2155_p9 = scmp.ne.s32.totalorder %s325_s12, %s2154_s3  ;;  %s2159_s19 = sshll.u32 %s2355_s18, 4  ;;  %s2160_s19 = int_to_ptr.vmem [resolvable:$false] %s2159_s19 }
  0x30   : > { %s2161_s6 = scalar_lea.vmem %s2160_s19, 1024  ;;  %p2162_p0 = scmp.lt.s32.totalorder %s325_s12, %s2160_s19 }
  0x31   : > { %p2157_p10 = pnand %p2155_p9, %p2143_p5  ;;  %p2163_p6 = scmp.lt.s32.totalorder %s2161_s6, %s2154_s3 }
  0x32   : > { %s322_s10 = scalar_lea.hbm %s3515_s1, %s1885_s20 }
  0x33   : > { %p2158_p12 = pneg %p2157_p10  ;;  %p2164_p2 = por %p2163_p6, %p2162_p0 }
  0x35   : > { %p2165_p7 = pnand %p2164_p2, %p2158_p12 }
  0x37   : > { %2168 = shalt.err (!%p2165_p7)
}
  0x38   : > { %2035 = dma.hbm_to_vmem [thread:$0]  (!%p2528_p4), %s322_s10, 512, %s325_s12, %s2541_s7  }
  0x39   : > { %p2555_p9 = pnand %p1889_p1, %p356_p3  ;;  %s1878_s3 = sshll.u32 %s2522_s8, 6 }
  0x3a   : > { %s1879_s26 = sshll.u32 %s2345_s13, 3  ;;  %s1880_s24 = sshll.u32 %s2349_s14, 4 }
  0x3b   : > { %s299_s25 = sadd.s32 %s1880_s24, %s1879_s26  ;;  %s293_s20 = scalar_lea.vmem [#allocation2], %s1878_s3 }
  0x3c   : > { %s303_s22 = sshll.u32 %s293_s20, 4  ;;  %s1881_s18 = sshll.u32 %s299_s25, 7  ;;  %s304_s22 = int_to_ptr.vmem [resolvable:$true] %s303_s22 }
  0x3d   : > { %s301_s1 = scalar_lea.hbm %s3447_s0, %s1881_s18  ;;  %s290_s11 = scalar_lea.sflag [#allocation3], %s2522_s8 }
  0x3e   : > { %s2182_s10 = scalar_lea.vmem %s304_s22, 1024  ;;  %s2356_s12 = smov [#allocation2]  }
  0x3f   : > { %p2183_p2 = scmp.ne.s32.totalorder %s304_s22, %s2182_s10  ;;  %s2187_s4 = sshll.u32 %s2356_s12, 4  ;;  %s2188_s4 = int_to_ptr.vmem [resolvable:$false] %s2187_s4 }
  0x40   : > { %s2189_s14 = scalar_lea.vmem %s2188_s4, 2048  ;;  %p2190_p0 = scmp.lt.s32.totalorder %s304_s22, %s2188_s4 }
  0x41   : > { %p2185_p6 = pnand %p2183_p2, %p2143_p5  ;;  %p2191_p1 = scmp.lt.s32.totalorder %s2189_s14, %s2182_s10 }
  0x43   : > { %p2186_p7 = pneg %p2185_p6  ;;  %p2192_p3 = por %p2191_p1, %p2190_p0 }
  0x45   : > { %p2193_p10 = pnand %p2192_p3, %p2186_p7 }
  0x47   : > { %2196 = shalt.err (!%p2193_p10)
}
  0x48   : > { %2032 = dma.hbm_to_vmem [thread:$0]  (!%p2528_p4), %s301_s1, 1024, %s304_s22, %s290_s11  }
  0x49   : > { %s102_s4 = sadd.s32 1, %s2321_s29  ;;  %p3517_p5 = scmp.eq.s32.totalorder %s2479_s21, 0 }
  0x4a   : > { %p109_p12 = scmp.ne.s32.totalorder %s2321_s29, %s2317_s28  ;;  %p115_p2 = scmp.ne.s32.totalorder %s2317_s28, %s2313_s27 }
  0x4b   : > { %s2575_s8 = scalar_select %p3517_p5, %s2321_s29, %s102_s4  }
  0x4c   : > { %s333_s14 = sand.u32 1, %s2321_s29   ;;  %s2019_s17 = sshll.u32 %s2345_s13, 8 }
  0x4d   : > { %p3518_p6 = scmp.eq.s32.totalorder %s2353_s15, 0  ;;  %p3519_p0 = scmp.eq.s32.totalorder %s2465_s16, 0 }
  0x4e   : > { %s1886_s26 = sshll.u32 %s333_s14, 4  ;;  %s341_s1 = scalar_lea.hbm %s3449_s2, %s2019_s17 }
  0x4f   : > { %p111_p7 = por %p109_p12, %p3518_p6  ;;  %p2587_p1 = por %p115_p2, %p3519_p0 }
  0x50   : > { %p3521_p4 = scmp.lt.s32.totalorder %s2353_s15, 4  ;;  %s335_s27 = scalar_lea.vmem [#allocation7], %s1886_s26 }
  0x51   : > { %s343_s21 = sshll.u32 %s335_s27, 4  ;;  %s2357_s22 = smov [#allocation7]   ;;  %s344_s21 = int_to_ptr.vmem [resolvable:$true] %s343_s21 }
  0x52   : > { %p2596_p3 = pnand %p3521_p4, %p111_p7  ;;  %s2210_s20 = scalar_lea.vmem %s344_s21, 256 }
  0x53   : > { %p2211_p5 = scmp.ne.s32.totalorder %s344_s21, %s2210_s20  ;;  %s2215_s18 = sshll.u32 %s2357_s22, 4  ;;  %s2216_s18 = int_to_ptr.vmem [resolvable:$false] %s2215_s18 }
  0x54   : > { %p2199_p10 = pneg %p2596_p3  ;;  %s2217_s19 = scalar_lea.vmem %s2216_s18, 512 }
  0x55   : > { %p2218_p6 = scmp.lt.s32.totalorder %s344_s21, %s2216_s18  ;;  %p2219_p0 = scmp.lt.s32.totalorder %s2217_s19, %s2210_s20 }
  0x56   : > { %p2213_p12 = pnand %p2211_p5, %p2199_p10 }
  0x57   : > { %p2220_p7 = por %p2219_p0, %p2218_p6 }
  0x58   : > { %p2214_p2 = pneg %p2213_p12 }
  0x5a   : > { %p2221_p4 = pnand %p2220_p7, %p2214_p2 }
  0x5c   : > { %2224 = shalt.err (!%p2221_p4)
}
  0x5d   : > { %2038 = dma.hbm_to_vmem [thread:$0]  (!%p2596_p3), %s341_s1, 256, %s344_s21, %s2541_s7  }
  0x5e   : > { %360 = sbr.rel (%p2555_p9) target bundleno = 848 (0x350), region = 52  ;;  %s2608_s6 = sand.u32 (!%p2555_p9), 1, %s2329_s9  }
  0x5f   : > { %s1890_s10 = sshll.u32 (!%p2555_p9), %s2608_s6, 6  ;;  %s363_s12 = scalar_lea.sflag (!%p2555_p9), [#allocation3], %s2608_s6 }
  0x60   : > { %s2614_s4 = scalar_lea.vmem (!%p2555_p9), [#allocation2], %s1890_s10 }
  0x63   : > { %2296 = dma.done.wait (%p2498_p8), %s363_s12, 1024  }
  0x64   : > { %2298 = vsyncadd (%p2498_p8), %s363_s12, 4294966272  ;;  %s371_s7 = sand.u32 1, %s2465_s16   ;;  %s1891_s30 = sshll.u32 %s2608_s6, 5 }
  0x65   : > { %s372_s14 = scalar_lea.sflag [#allocation6], %s371_s7  ;;  %s2622_s17 = scalar_lea.vmem [#allocation5], %s1891_s30 }
  0x66   : > { %2300 = dma.done.wait (%p2498_p8), %s372_s14, 512  }
  0x67   : > { %2302 = vsyncadd (%p2498_p8), %s372_s14, 4294966784  ;;  %s382_s26 = sand.u32 1, %s2317_s28  }
  0x68   : > { %s2629_s24 = sshll.u32 %s382_s26, 4 }
  0x69   : > { %s384_s25 = scalar_lea.vmem [#allocation7], %s2629_s24 }
  0x6a   : > { %2304 = dma.done.wait (%p2587_p1), %s372_s14, 256  }
  0x6b   : > { %2306 = vsyncadd (%p2587_p1), %s372_s14, 4294967040  ;;  %v2637_v0 = vld [vmem:[%s2614_s4 + $0x8] sm:$0xff]  ;;  %v2640_v1 = vld [vmem:[%s2614_s4] sm:$0xff]  ;;  %s2358_s16 = smov 127   ;;  %s2359_s23 = smov 1   ;;  %v2360_v7 = vmov 0.0   ;;  %v440_v15 = vlaneseq }
  0x6c   : > { %712 = vrot.lane.b32.xlu0 %v2637_v0, %s2358_s16  ;;  %710 = vrot.lane.b32.xlu1 %v2640_v1, %s2358_s16  ;;  %v2647_v2 = vld [vmem:[%s2614_s4 + $0x10] sm:$0xff]  ;;  %v2650_v3 = vld [vmem:[%s2614_s4 + $0x18] sm:$0xff]  ;;  %v2361_v14 = vmov 0   ;;  %v3527_v33 = vmov 0  ;;  %v3529_v36 = vmov 0  ;;  %v3531_v39 = vmov 0 }
  0x6d   : > { %v2657_v4 = vld [vmem:[%s2614_s4 + $0x20] sm:$0xff]  ;;  %v2664_v5 = vld [vmem:[%s2622_s17 + $0x8] sm:$0xff]  ;;  %919 = vmatprep.mubr.f32.mxu1 %v2360_v7  ;;  %848 = vmatprep.mubr.f32.mxu0 %v2360_v7  ;;  %v2684_v8 = vld [vmem:[%s2622_s17 + $0x18] sm:$0xff]  ;;  %v2726_v16 = vand.u32 127, %v440_v15  ;;  %v3533_v43 = vmov 0  ;;  %v3535_v46 = vmov 0 }
  0x6e   : > { %v2675_v6 = vld [vmem:[%s2622_s17] sm:$0xff]  ;;  %v2691_v9 = vld [vmem:[%s2614_s4 + $0x28] sm:$0xff]  ;;  %v2694_v10 = vld [vmem:[%s2614_s4 + $0x30] sm:$0xff]  ;;  %2138 = vset.pattern.permute.xlu0 %v2361_v14  ;;  %v3537_v50 = vmov 0  ;;  %v3539_v53 = vmov 0  ;;  %v3541_v58 = vmov 0 }
  0x6f   : > { %v2701_v11 = vld [vmem:[%s2614_s4 + $0x38] sm:$0xff]  ;;  %v2704_v12 = vld [vmem:[%s2622_s17 + $0x10] sm:$0xff]  ;;  %v1246_v13 = vld [vmem:[%s3452_s5] sm:$0xff]  ;;  %v444_v17 = vadd.s32 384, %v2726_v16  ;;  %v443_v18 = vadd.s32 256, %v2726_v16  ;;  %v446_v20 = vadd.s32 640, %v2726_v16 }
  0x70   : > { %714 = vrot.lane.b32.xlu0 %v2647_v2, %s2358_s16  ;;  %716 = vrot.lane.b32.xlu1 %v2650_v3, %s2358_s16  ;;  %v445_v24 = vadd.s32 512, %v2726_v16  ;;  %vm3474_vm1 = vcmp.lt.s32.totalorder %v2726_v16, 127  ;;  %vm3470_vm5 = vcmp.lt.s32.totalorder %v2726_v16, 1  ;;  %v442_v40 = vadd.s32 128, %v2726_v16  ;;  %s3543_s21 = sld [smem:[#allocation25_spill]]  ;;  %s1713_s12 = scalar_lea.sflag [#allocation4], %s2608_s6 }
  0x71   : > { %v478_v19 = vand.u32 127, %v444_v17  ;;  %v471_v23 = vand.u32 127, %v443_v18  ;;  %v492_v26 = vand.u32 127, %v446_v20  ;;  %v448_v57 = vadd.s32 896, %v2726_v16  ;;  %s3573_s20 = sld [smem:[#allocation15_spill]] }
  0x72   : > { %v485_v30 = vand.u32 127, %v445_v24  ;;  %v464_v47 = vand.u32 127, %v442_v40  ;;  %v447_v59 = vadd.s32 768, %v2726_v16  ;;  %v2846_v60 = vadd.s32 1152, %v2726_v16  ;;  %s3574_s4 = sld [smem:[#allocation24_spill]] }
  0x73   : > { %vm2732_vm0 = vcmp.le.s32.totalorder %v478_v19, 22  ;;  %vm2737_vm2 = vcmp.le.s32.totalorder %v471_v23, 22  ;;  %vm2749_vm3 = vcmp.le.s32.totalorder %v492_v26, 22  ;;  %vm2777_vm6 = vcmp.ge.s32.totalorder %v478_v19, 1  ;;  %s3575_s17 = sld [smem:[#allocation27_spill]] }
  0x74   : > { %718 = vrot.lane.b32.xlu0 %v2657_v4, %s2358_s16  ;;  %637 = vrot.lane.b32.xlu1 %v2640_v1, %s2359_s23  ;;  %v3528_v33 = vsel %vm2749_vm3, 4294967295, %v3527_v33  ;;  %vm2755_vm4 = vcmp.le.s32.totalorder %v485_v30, 22  ;;  %v3532_v39 = vsel %vm2777_vm6, 4294967295, %v3531_v39  ;;  %vm2782_vm7 = vcmp.ge.s32.totalorder %v471_v23, 1 }
  0x75   : > { %v3530_v36 = vsel %vm2755_vm4, 4294967295, %v3529_v36  ;;  %v3534_v43 = vsel %vm2782_vm7, 4294967295, %v3533_v43  ;;  %vm2796_vm8 = vcmp.ge.s32.totalorder %v492_v26, 1  ;;  %vm2804_vm9 = vcmp.ge.s32.totalorder %v485_v30, 1 }
  0x76   : > { %v3536_v46 = vsel %vm2796_vm8, 4294967295, %v3535_v46  ;;  %v3538_v50 = vsel %vm2804_vm9, 4294967295, %v3537_v50  ;;  %vm2823_vm10 = vcmp.le.s32.totalorder %v464_v47, 22  ;;  %vm2840_vm11 = vcmp.ge.s32.totalorder %v464_v47, 1  ;;  %v2887_v23 = vld [vmem:[%s3543_s21] sm:$0xff] }
  0x77   : > { %v3540_v53 = vsel %vm2823_vm10, 4294967295, %v3539_v53  ;;  %v3542_v58 = vsel %vm2840_vm11, 4294967295, %v3541_v58  ;;  %v2857_v63 = vadd.s32 1024, %v2726_v16  ;;  %vm3469_vm12 = vcmp.le.s32.totalorder %v2726_v16, 22  ;;  %p434_p8 = scmp.lt.s32.totalorder %s3573_s20, 1  ;;  %s2014_s3 = sshll.u32 %s3573_s20, 3 }
  0x78   : > { %639 = vrot.lane.b32.xlu0 %v2637_v0, %s2359_s23  ;;  %635 = vrot.lane.b32.xlu1 %v2664_v5, %s2359_s23  ;;  %v506_v14 = vand.u32 127, %v448_v57  ;;  %v499_v18 = vand.u32 127, %v447_v59  ;;  %v520_v19 = vand.u32 127, %v2846_v60  ;;  %vm3473_vm13 = vcmask 588800  }
  0x79   : > { %v451_v57 = vadd.s32 1280, %v2726_v16  ;;  %s435_s22 = scalar_select %p434_p8, %s3573_s20, 1 }
  0x7a   : > { %vm2893_vm15 = vcmp.le.s32.totalorder %v506_v14, 22  ;;  %vm2908_vm14 = vcmp.le.s32.totalorder %v520_v19, 22 }
  0x7b   : > { %v527_v60 = vand.u32 127, %v451_v57  ;;  %v1141_v57 = vld [vmem:[%s384_s25 + $0x8] sm:$0xff]  ;;  %s2020_s18 = sshll.u32 %s435_s22, 2 }
  0x7c   : > { %641 = vrot.lane.b32.xlu0 %v2647_v2, %s2359_s23  ;;  %643 = vrot.lane.b32.xlu1 %v2650_v3, %s2359_s23  ;;  %s438_s7 = scalar_lea.vmem %s3574_s4, %s2020_s18  ;;  %s3611_s18 = sld [smem:[#allocation28_spill]] }
  0x80   : > { %708 = vrot.lane.b32.xlu0 %v2664_v5, %s2358_s16  ;;  %633 = vrot.lane.b32.xlu1 %v2675_v6, %s2359_s23 }
  0x84   : > { %706 = vrot.lane.b32.xlu0 %v2675_v6, %s2358_s16  ;;  %655 = vrot.lane.b32.xlu1 %v2684_v8, %s2359_s23 }
  0x88   : > { %720 = vrot.lane.b32.xlu0 %v2691_v9, %s2358_s16  ;;  %722 = vrot.lane.b32.xlu1 %v2694_v10, %s2358_s16 }
  0x8c   : > { %724 = vrot.lane.b32.xlu0 %v2701_v11, %s2358_s16  ;;  %726 = vrot.lane.b32.xlu1 %v2704_v12, %s2358_s16 }
  0x90   : > { %645 = vrot.lane.b32.xlu0 %v2657_v4, %s2359_s23  ;;  %647 = vrot.lane.b32.xlu1 %v2691_v9, %s2359_s23 }
  0x94   : > { %649 = vrot.lane.b32.xlu0 %v2694_v10, %s2359_s23  ;;  %651 = vrot.lane.b32.xlu1 %v2701_v11, %s2359_s23 }
  0x98   : > { %728 = vrot.lane.b32.xlu0 %v2684_v8, %s2358_s16  ;;  %653 = vrot.lane.b32.xlu1 %v2704_v12, %s2359_s23 }
  0x9c   : > { %1249 = vperm.xlu0 %2138, %v1246_v13  }
  0xde   : > { %v713_v21 = vpop.permute.xlu0 %712  ;;  %v711_v22 = vpop.permute.xlu1 %710 }
  0xdf   : > { %v739_v32 = vsel %vm3474_vm1, %v711_v22, %v713_v21 }
  0xe2   : > { %v715_v27 = vpop.permute.xlu0 %714  ;;  %v717_v28 = vpop.permute.xlu1 %716 }
  0xe3   : > { %v738_v31 = vsel %vm3474_vm1, %v713_v21, %v715_v27  ;;  %v2771_v38 = vsel %vm3474_vm1, %v715_v27, %v717_v28 }
  0xe4   : > { %1896 = vmatprep.subr.msk.mxu0 %vm2732_vm0, %v738_v31 }
  0xe5   : > { %1897 = vmatpush1.msk.msra.mxu0 %vm2737_vm2, %v739_v32 }
  0xe6   : > { %v2753_v34 = vpop.permute.xlu0 %718  ;;  %v638_v35 = vpop.permute.xlu1 %637  ;;  %800 = vmatprep.subr.mxu0 %v2637_v0 }
  0xe7   : > { %v2763_v37 = vsel %vm3474_vm1, %v717_v28, %v2753_v34  ;;  %801 = vmatpush1.msra.mxu0 %v2640_v1 }
  0xe8   : > { %1909 = vmatprep.subr.msk.mxu1 %vm2749_vm3, %v2763_v37 }
  0xe9   : > { %1910 = vmatpush1.msk.msra.mxu1 %vm2755_vm4, %v2771_v38 }
  0xea   : > { %v640_v41 = vpop.permute.xlu0 %639  ;;  %v636_v42 = vpop.permute.xlu1 %635  ;;  %871 = vmatprep.subr.mxu1 %v2650_v3 }
  0xeb   : > { %v666_v44 = vsel %vm3470_vm5, %v638_v35, %v640_v41  ;;  %v667_v45 = vsel %vm3470_vm5, %v636_v42, %v638_v35  ;;  %872 = vmatpush1.msra.mxu1 %v2647_v2 }
  0xec   : > { %1898 = vmatprep.subr.msk.mxu0 %vm2777_vm6, %v666_v44 }
  0xed   : > { %1899 = vmatpush1.msk.msra.mxu0 %vm2782_vm7, %v667_v45 }
  0xee   : > { %v642_v48 = vpop.permute.xlu0 %641  ;;  %1900 = vmatprep.subr.msk.mxu0 %vm2737_vm2, %v739_v32  ;;  %v2802_v49 = vpop.permute.xlu1 %643 }
  0xef   : > { %v2810_v51 = vsel %vm3470_vm5, %v640_v41, %v642_v48  ;;  %v2815_v52 = vsel %vm3470_vm5, %v642_v48, %v2802_v49 }
  0xf0   : > { %1911 = vmatprep.subr.msk.mxu1 %vm2796_vm8, %v2815_v52 }
  0xf1   : > { %1912 = vmatpush1.msk.msra.mxu1 %vm2804_vm9, %v2810_v51 }
  0xf2   : > { %v709_v54 = vpop.permute.xlu0 %708  ;;  %1913 = vmatprep.subr.msk.mxu1 %vm2755_vm4, %v2771_v38  ;;  %v634_v55 = vpop.permute.xlu1 %633 }
  0xf3   : > { %v740_v56 = vsel %vm3474_vm1, %v709_v54, %v711_v22  ;;  %1914 = vmatpush1.msk.msra.mxu1 %vm2732_vm0, %v738_v31  ;;  %v668_v13 = vsel %vm3470_vm5, %v634_v55, %v636_v42  ;;  %v513_v22 = vand.u32 127, %v2857_v63 }
  0xf4   : > { %1901 = vmatpush1.msk.msra.mxu0 %vm2823_vm10, %v740_v56  ;;  %877 = vmatprep.subr.mxu1 %v2647_v2 }
  0xf5   : > { %806 = vmatprep.subr.mxu0 %v2640_v1  ;;  %878 = vmatpush1.msra.mxu1 %v2637_v0 }
  0xf6   : > { %807 = vmatpush1.msra.mxu0 %v2664_v5  ;;  %1915 = vmatprep.subr.msk.mxu1 %vm2804_vm9, %v2810_v51  ;;  %v2852_v61 = vpop.permute.xlu0 %706  ;;  %v2854_v62 = vpop.permute.xlu1 %655 }
  0xf7   : > { %1902 = vmatprep.subr.msk.mxu0 %vm2782_vm7, %v667_v45  ;;  %1916 = vmatpush1.msk.msra.mxu1 %vm2777_vm6, %v666_v44  ;;  %v741_v17 = vsel %vm3474_vm1, %v2852_v61, %v709_v54 }
  0xf8   : > { %1903 = vmatpush1.msk.msra.mxu0 %vm2840_vm11, %v668_v13  ;;  %1917 = vmatprep.subr.msk.mxu1 %vm2732_vm0, %v738_v31 }
  0xf9   : > { %1904 = vmatprep.subr.msk.mxu0 %vm2823_vm10, %v740_v56  ;;  %1918 = vmatpush1.msk.msra.mxu1 %vm2737_vm2, %v739_v32  ;;  %v452_v56 = vadd.s32 1408, %v2726_v16 }
  0xfa   : > { %883 = vmatprep.subr.mxu1 %v2637_v0  ;;  %v721_v20 = vpop.permute.xlu0 %720  ;;  %1905 = vmatpush1.msk.msra.mxu0 %vm3469_vm12, %v741_v17  ;;  %v723_v21 = vpop.permute.xlu1 %722  ;;  %v3544_v0 = vmov 0  ;;  %vm2904_vm12 = vcmp.le.s32.totalorder %v499_v18, 22 }
  0xfb   : > { %812 = vmatprep.subr.mxu0 %v2664_v5  ;;  %884 = vmatpush1.msra.mxu1 %v2640_v1  ;;  %v3545_v0 = vsel %vm2893_vm15, 4294967295, %v3544_v0  ;;  %v669_v1 = vsel %vm3470_vm5, %v2854_v62, %v634_v55  ;;  %v734_v24 = vsel %vm3474_vm1, %v721_v20, %v723_v21  ;;  %vm3550_vm5 = vcmp.ge.s32.totalorder %v2726_v16, 1 }
  0xfc   : > { %813 = vmatpush1.msra.mxu0 %v2675_v6  ;;  %1919 = vmatprep.subr.msk.mxu1 %vm2777_vm6, %v666_v44  ;;  %v735_v30 = vsel %vm3474_vm1, %v2753_v34, %v721_v20  ;;  %v534_v59 = vand.u32 127, %v452_v56 }
  0xfd   : > { %1906 = vmatprep.subr.msk.mxu0 %vm2840_vm11, %v668_v13  ;;  %1920 = vmatpush1.msk.msra.mxu1 %vm2782_vm7, %v667_v45  ;;  %vm2918_vm11 = vcmp.le.s32.totalorder %v513_v22, 22  ;;  %vm2968_vm7 = vcmp.ge.s32.totalorder %v520_v19, 1 }
  0xfe   : > { %1921 = vmatmul.mubr.msk.f32.vlgmr.msra.gmra.mxu1 %vm3473_vm13, %v2887_v23  ;;  %v725_v26 = vpop.permute.xlu0 %724  ;;  %1907 = vmatpush1.msk.msra.mxu0 %vm3550_vm5, %v669_v1  ;;  %v727_v27 = vpop.permute.xlu1 %726  ;;  %vm2946_vm5 = vcmp.ge.s32.totalorder %v506_v14, 1 }
  0xff   : > { %v2927_v31 = vsel %vm3474_vm1, %v723_v21, %v725_v26  ;;  %v2931_v32 = vsel %vm3474_vm1, %v725_v26, %v727_v27  ;;  %1908 = vmatmul.mubr.msk.f32.vlgmr.msra.gmra.mxu0 %vm3473_vm13, %v2887_v23  ;;  %1922 = vmatprep.subr.msk.mxu0 %vm2893_vm15, %v734_v24  ;;  %vm2951_vm13 = vcmp.ge.s32.totalorder %v499_v18, 1  ;;  %vm3557_vm1 = vcmp.lt.s32.totalorder %v2726_v16, 1 }
 0x100   : > { %1923 = vmatpush1.msk.msra.mxu0 %vm2904_vm12, %v735_v30  ;;  %1935 = vmatprep.subr.msk.mxu1 %vm2908_vm14, %v2931_v32  ;;  %vm3558_vm10 = vmmov %vm3557_vm1 }
 0x101   : > { %1936 = vmatpush1.msk.msra.mxu1 %vm2918_vm11, %v2927_v31  ;;  %942 = vmatprep.subr.mxu0 %v2691_v9  ;;  %vm3563_vm6 = vmmov %vm3558_vm10 }
 0x102   : > { %v646_v35 = vpop.permute.xlu0 %645  ;;  %v648_v40 = vpop.permute.xlu1 %647  ;;  %943 = vmatpush1.msra.mxu0 %v2657_v4  ;;  %1013 = vmatprep.subr.mxu1 %v2701_v11 }
 0x103   : > { %v663_v42 = vsel %vm3557_vm1, %v2802_v49, %v646_v35  ;;  %v662_v44 = vsel %vm3558_vm10, %v646_v35, %v648_v40  ;;  %1014 = vmatpush1.msra.mxu1 %v2694_v10  ;;  %990 = vmatprep.mubr.f32.mxu0 %v2360_v7  ;;  %vm2974_vm1 = vcmp.ge.s32.totalorder %v513_v22, 1  ;;  %v3561_v49 = vmov 0 }
 0x104   : > { %1924 = vmatprep.subr.msk.mxu0 %vm2946_vm5, %v662_v44  ;;  %1061 = vmatprep.mubr.f32.mxu1 %v2360_v7  ;;  %v3562_v49 = vsel %vm2974_vm1, 4294967295, %v3561_v49 }
 0x105   : > { %1925 = vmatpush1.msk.msra.mxu0 %vm2951_vm13, %v663_v42 }
 0x106   : > { %v650_v47 = vpop.permute.xlu0 %649  ;;  %1926 = vmatprep.subr.msk.mxu0 %vm2904_vm12, %v735_v30  ;;  %v652_v48 = vpop.permute.xlu1 %651 }
 0x107   : > { %v661_v54 = vsel %vm3558_vm10, %v648_v40, %v650_v47  ;;  %v660_v55 = vsel %vm3563_vm6, %v650_v47, %v652_v48  ;;  %1927 = vmatpush1.msk.msra.mxu0 %vm2749_vm3, %v2763_v37  ;;  %vm620_vm6 = vcmp.le.s32.totalorder %v534_v59, 22  ;;  %vm3025_vm10 = vcmp.le.s32.totalorder %v527_v60, 22 }
 0x108   : > { %948 = vmatprep.subr.mxu0 %v2657_v4  ;;  %1937 = vmatprep.subr.msk.mxu1 %vm2968_vm7, %v660_v55 }
 0x109   : > { %949 = vmatpush1.msra.mxu0 %v2650_v3  ;;  %1938 = vmatpush1.msk.msra.mxu1 %vm2974_vm1, %v661_v54 }
 0x10a   : > { %1928 = vmatprep.subr.msk.mxu0 %vm2951_vm13, %v663_v42  ;;  %1939 = vmatprep.subr.msk.mxu1 %vm2918_vm11, %v2927_v31  ;;  %v729_v63 = vpop.permute.xlu0 %728 }
 0x10b   : > { %1929 = vmatpush1.msk.msra.mxu0 %vm2796_vm8, %v2815_v52  ;;  %1940 = vmatpush1.msk.msra.mxu1 %vm2893_vm15, %v734_v24 }
 0x10c   : > { %1930 = vmatprep.subr.msk.mxu0 %vm2749_vm3, %v2763_v37  ;;  %1019 = vmatprep.subr.mxu1 %v2694_v10 }
 0x10d   : > { %1931 = vmatpush1.msk.msra.mxu0 %vm2755_vm4, %v2771_v38  ;;  %1020 = vmatpush1.msra.mxu1 %v2691_v9  ;;  %vm3566_vm4 = vcmp.lt.s32.totalorder %v2726_v16, 127  ;;  %v654_v38 = vpop.permute.xlu1 %653 }
 0x10e   : > { %954 = vmatprep.subr.mxu0 %v2650_v3  ;;  %1941 = vmatprep.subr.msk.mxu1 %vm2974_vm1, %v661_v54 }
 0x10f   : > { %955 = vmatpush1.msra.mxu0 %v2647_v2  ;;  %1942 = vmatpush1.msk.msra.mxu1 %vm2946_vm5, %v662_v44  ;;  %v742_v2 = vsel %vm3566_vm4, %v729_v63, %v2852_v61 }
 0x110   : > { %1932 = vmatprep.subr.msk.mxu0 %vm2796_vm8, %v2815_v52  ;;  %1943 = vmatprep.subr.msk.mxu1 %vm2893_vm15, %v734_v24  ;;  %vm3567_vm8 = vcmask 588800   ;;  %vm3568_vm15 = vmmov %vm3566_vm4  ;;  %vm607_vm4 = vcmp.ge.s32.totalorder %v527_v60, 1  ;;  %v1149_v52 = vshrl.u32 %v440_v15, 7 }
 0x111   : > { %1933 = vmatpush1.msk.msra.mxu0 %vm2804_vm9, %v2810_v51  ;;  %1944 = vmatpush1.msk.msra.mxu1 %vm2904_vm12, %v735_v30  ;;  %v731_v37 = vsel %vm3568_vm15, %v727_v27, %v729_v63  ;;  %vm608_vm9 = vcmp.ge.s32.totalorder %v534_v59, 1 }
 0x112   : > { %1934 = vmatmul.mubr.msk.f32.vlgmr.msra.gmra.mxu0 %vm3567_vm8, %v2887_v23  ;;  %1025 = vmatprep.subr.mxu1 %v2691_v9  ;;  %vm3569_vm8 = vcmp.lt.s32.totalorder %v2726_v16, 1  ;;  %v3087_v14 = vsub.s32 0, %v1149_v52  ;;  %v3091_v19 = vsub.s32 1, %v1149_v52 }
 0x113   : > { %1948 = vmatprep.subr.msk.mxu0 %vm620_vm6, %v742_v2  ;;  %1026 = vmatpush1.msra.mxu1 %v2657_v4  ;;  %v658_v51 = vsel %vm3569_vm8, %v654_v38, %v2854_v62  ;;  %vm3570_vm15 = vmmov %vm3569_vm8  ;;  %vm3571_vm6 = vcmask 588800  }
 0x114   : > { %1949 = vmatpush1.msk.msra.mxu0 %vm3025_vm10, %v731_v37  ;;  %1945 = vmatprep.subr.msk.mxu1 %vm2946_vm5, %v662_v44  ;;  %v659_v4 = vsel %vm3570_vm15, %v652_v48, %v654_v38  ;;  %vm3578_vm15 = vmmov %vm3569_vm8 }
 0x115   : > { %1084 = vmatprep.subr.mxu0 %v2684_v8  ;;  %1946 = vmatpush1.msk.msra.mxu1 %vm2951_vm13, %v663_v42  ;;  %v2362_v8 = vmov 1983009808  }
 0x116   : > { %1085 = vmatpush1.msra.mxu0 %v2704_v12  ;;  %1947 = vmatmul.mubr.msk.f32.vlgmr.msra.gmra.mxu1 %vm3571_vm6, %v2887_v23  ;;  %v1146_v9 = vunpack.c.l.s4 %v2362_v8 }
 0x117   : > { %1950 = vmatprep.subr.msk.mxu0 %vm608_vm9, %v658_v51  ;;  %1132 = vmatprep.mubr.f32.mxu0 %v2360_v7  ;;  %vm3572_vm9 = vmmov %vm3571_vm6  ;;  %v3094_v21 = vpop.permute.xlu0 %1249  ;;  %v1139_v51 = vld [vmem:[%s438_s7] sm:$0xf]  ;;  %s2363_s7 = smov [#allocation8]  }
 0x118   : > { %1951 = vmatpush1.msk.msra.mxu0 %vm607_vm4, %v659_v4  ;;  %1476 = vmatprep.mubr.f32.mxu1 %v2360_v7  ;;  %s2229_s30 = sshll.u32 %s2363_s7, 4  ;;  %s2230_s30 = int_to_ptr.vmem [resolvable:$false] %s2229_s30 }
 0x119   : > { %1952 = vmatprep.subr.msk.mxu0 %vm3025_vm10, %v731_v37  ;;  %vm3576_vm10 = vcmp.lt.s32.totalorder %v2726_v16, 127  ;;  %s2231_s14 = scalar_lea.vmem %s2230_s30, 2048 }
 0x11a   : > { %1953 = vmatpush1.msk.msra.mxu0 %vm2908_vm14, %v2931_v32 }
 0x11b   : > { %1090 = vmatprep.subr.mxu0 %v2704_v12  ;;  %v1147_v12 = vunpack.c.0.s8 %v1146_v9  ;;  %v1161_v9 = vcombine.high %v1141_v57, %v1141_v57 }
 0x11c   : > { %1091 = vmatpush1.msra.mxu0 %v2701_v11 }
 0x11d   : > { %1954 = vmatprep.subr.msk.mxu0 %vm607_vm4, %v659_v4  ;;  %v3082_v61 = vsub.s32 %v1147_v12, %v1149_v52  ;;  %vm3577_vm4 = vmmov %vm3576_vm10 }
 0x11e   : > { %1955 = vmatpush1.msk.msra.mxu0 %vm2968_vm7, %v660_v55  ;;  %vm3579_vm6 = vmmov %vm3577_vm4 }
 0x11f   : > { %1956 = vmatprep.subr.msk.mxu0 %vm2908_vm14, %v2931_v32  ;;  %v1168_v60 = vrot.slane %v1141_v57, %v3082_v61 }
 0x120   : > { %1957 = vmatpush1.msk.msra.mxu0 %vm2918_vm11, %v2927_v31 }
 0x121   : > { %1096 = vmatprep.subr.mxu0 %v2701_v11  ;;  %v1176_v2 = vcombine.high %v1168_v60, %v1168_v60  ;;  %v1219_v37 = vrot.slane %v1168_v60, %v3087_v14 }
 0x122   : > { %1097 = vmatpush1.msra.mxu0 %v2694_v10  ;;  %v1140_v10 = vld [vmem:[%s384_s25] sm:$0xff]  ;;  %s3591_s25 = sld [smem:[#allocation26_spill]] }
 0x123   : > { %1958 = vmatprep.subr.msk.mxu0 %vm2968_vm7, %v660_v55  ;;  %v1151_v11 = vrot.slane %v1140_v10, %v3082_v61  ;;  %v1144_v62 = vcombine.high %v1140_v10, %v1140_v10  ;;  %v1223_v52 = vrot.slane %v1176_v2, %v3087_v14 }
 0x124   : > { %1959 = vmatpush1.msk.msra.mxu0 %vm2974_vm1, %v661_v54  ;;  %vm3585_vm1 = vnez %v3536_v46 }
 0x125   : > { %1960 = vmatmul.mubr.msk.f32.vlgmr.msra.gmra.mxu0 %vm3572_vm9, %v2887_v23  ;;  %v1159_v13 = vcombine.high %v1151_v11, %v1151_v11  ;;  %v1158_v17 = vrot.slane %v1144_v62, %v3082_v61  ;;  %v1203_v22 = vrot.slane %v1151_v11, %v3087_v14  ;;  %v1269_v47 = vrot.slane %v1151_v11, %v3091_v19 }
 0x126   : > { %1547 = vmatprep.mubr.f32.mxu0 %v2360_v7  ;;  %v1285_v62 = vrot.slane %v1168_v60, %v3091_v19  ;;  %vm3580_vm9 = vnez %v3532_v39 }
 0x127   : > { %v1207_v18 = vrot.slane %v1159_v13, %v3087_v14  ;;  %v1211_v20 = vrot.slane %v1158_v17, %v3087_v14  ;;  %v1273_v1 = vrot.slane %v1159_v13, %v3091_v19  ;;  %v1277_v31 = vrot.slane %v1158_v17, %v3091_v19 }
 0x128   : > { %v1160_v59 = vcombine.high %v1158_v17, %v1158_v17  ;;  %v1199_v13 = vrot.slane %v1139_v51, %v3087_v14  ;;  %v1402_v25 = vld [vmem:[%s3591_s25] sm:$0xff] }
 0x12a   : > { %v1215_v3 = vrot.slane %v1160_v59, %v3087_v14  ;;  %v1281_v8 = vrot.slane %v1160_v59, %v3091_v19 }
 0x1be   : > { %v921_v15 = vpop.f32.mrf.mxu1 }
 0x1bf   : > { %v1238_v23 = vmul.f32 %v1207_v18, %v921_v15  ;;  %v850_v24 = vpop.f32.mrf.mxu0  ;;  %v1175_v15 = vrot.slane %v1161_v9, %v3082_v61 }
 0x1c0   : > { %v923_v26 = vpop.f32.mrf.mxu1 }
 0x1c1   : > { %v852_v27 = vpop.f32.mrf.mxu0  ;;  %v1239_v30 = vmul.f32 %v1211_v20, %v923_v26  ;;  %v1254_v32 = vadd.f32 %v3094_v21, %v1238_v23  ;;  %v1289_v23 = vrot.slane %v1176_v2, %v3091_v19 }
 0x1c2   : > { %v1237_v35 = vmul.f32 %v1203_v22, %v852_v27  ;;  %v1236_v27 = vmul.f32 %v1199_v13, %v850_v24 }
 0x1c3   : > { %v1255_v40 = vadd.f32 %v3094_v21, %v1239_v30  ;;  %v1304_v42 = vmul.f32 %v1273_v1, %v1254_v32  ;;  %v1227_v32 = vrot.slane %v1175_v15, %v3087_v14 }
 0x1c4   : > { %v1253_v44 = vadd.f32 %v3094_v21, %v1237_v35  ;;  %v1252_v24 = vadd.f32 %v3094_v21, %v1236_v27 }
 0x1c5   : > { %v1305_v48 = vmul.f32 %v1277_v31, %v1255_v40  ;;  %v3104_v54 = vmax.f32 %v1304_v42, 0.0  ;;  %v1193_v42 = vrot.slane %v1139_v51, %v3082_v61 }
 0x1c6   : > { %v1303_v56 = vmul.f32 %v1269_v47, %v1253_v44  ;;  %v1177_v47 = vcombine.high %v1175_v15, %v1175_v15 }
 0x1c7   : > { %v3106_v55 = vmax.f32 %v1305_v48, 0.0  ;;  %1326 = vrot.lane.b32.xlu1 %v3104_v54, %s2359_s23  ;;  %1366 = vrot.lane.b32.xlu0 %v3104_v54, %s2358_s16  ;;  %v1265_v48 = vrot.slane %v1139_v51, %v3091_v19  ;;  %v1194_v57 = vcombine.high %v1193_v42, %v1193_v42 }
 0x1c8   : > { %v3120_v63 = vmax.f32 %v1303_v56, 0.0  ;;  %v1231_v61 = vrot.slane %v1177_v47, %v3087_v14  ;;  %v1297_v51 = vrot.slane %v1177_v47, %v3091_v19 }
 0x1c9   : > { %v1302_v59 = vmul.f32 %v1265_v48, %v1252_v24  ;;  %v1235_v2 = vrot.slane %v1194_v57, %v3087_v14 }
 0x1cb   : > { %1368 = vrot.lane.b32.xlu1 %v3106_v55, %s2358_s16  ;;  %1328 = vrot.lane.b32.xlu0 %v3106_v55, %s2359_s23 }
 0x1cf   : > { %1324 = vrot.lane.b32.xlu1 %v3120_v63, %s2359_s23 }
 0x1d2   : > { %v992_v38 = vpop.f32.mrf.mxu0 }
 0x1d3   : > { %v1240_v4 = vmul.f32 %v1215_v3, %v992_v38  ;;  %v1293_v3 = vrot.slane %v1175_v15, %v3091_v19 }
 0x1d4   : > { %v994_v12 = vpop.f32.mrf.mxu0 }
 0x1d5   : > { %v1256_v10 = vadd.f32 %v3094_v21, %v1240_v4  ;;  %v1241_v11 = vmul.f32 %v1219_v37, %v994_v12  ;;  %v3165_v4 = vmax.f32 %v1302_v59, 0.0 }
 0x1d6   : > { %v1063_v20 = vpop.f32.mrf.mxu1 }
 0x1d7   : > { %v1306_v17 = vmul.f32 %v1281_v8, %v1256_v10  ;;  %v1257_v18 = vadd.f32 %v3094_v21, %v1241_v11  ;;  %v1242_v22 = vmul.f32 %v1223_v52, %v1063_v20  ;;  %v1301_v10 = vrot.slane %v1194_v57, %v3091_v19  ;;  %v1403_v19 = vld [vmem:[%s3575_s17] sm:$0xff] }
 0x1d8   : > { %v1065_v40 = vpop.f32.mrf.mxu1 }
 0x1d9   : > { %v3137_v1 = vmax.f32 %v1306_v17, 0.0  ;;  %v1307_v26 = vmul.f32 %v1285_v62, %v1257_v18  ;;  %v1258_v30 = vadd.f32 %v3094_v21, %v1242_v22  ;;  %v1243_v56 = vmul.f32 %v1227_v32, %v1065_v40 }
 0x1db   : > { %v3140_v31 = vmax.f32 %v1307_v26, 0.0  ;;  %1370 = vrot.lane.b32.xlu1 %v3137_v1, %s2358_s16  ;;  %v1308_v35 = vmul.f32 %v1289_v23, %v1258_v30  ;;  %v1259_v60 = vadd.f32 %v3094_v21, %v1243_v56 }
 0x1dd   : > { %1372 = vrot.lane.b32.xlu0 %v3140_v31, %s2358_s16  ;;  %v3148_v44 = vmax.f32 %v1308_v35, 0.0  ;;  %v1309_v8 = vmul.f32 %v1293_v3, %v1259_v60 }
 0x1df   : > { %1374 = vrot.lane.b32.xlu1 %v3148_v44, %s2358_s16  ;;  %v3174_v62 = vmax.f32 %v1309_v8, 0.0 }
 0x1e1   : > { %1332 = vrot.lane.b32.xlu0 %v3140_v31, %s2359_s23 }
 0x1e3   : > { %1330 = vrot.lane.b32.xlu1 %v3137_v1, %s2359_s23 }
 0x1e5   : > { %v1134_v37 = vpop.f32.mrf.mxu0  ;;  %1364 = vrot.lane.b32.xlu0 %v3120_v63, %s2358_s16 }
 0x1e6   : > { %v1244_v38 = vmul.f32 %v1231_v61, %v1134_v37 }
 0x1e7   : > { %v1136_v9 = vpop.f32.mrf.mxu0  ;;  %1322 = vrot.lane.b32.xlu1 %v3165_v4, %s2359_s23 }
 0x1e8   : > { %v1260_v12 = vadd.f32 %v3094_v21, %v1244_v38  ;;  %v1245_v52 = vmul.f32 %v1235_v2, %v1136_v9 }
 0x1e9   : > { %1362 = vrot.lane.b32.xlu0 %v3165_v4, %s2358_s16 }
 0x1ea   : > { %v1310_v14 = vmul.f32 %v1297_v51, %v1260_v12  ;;  %v1261_v11 = vadd.f32 %v3094_v21, %v1245_v52 }
 0x1ec   : > { %v3176_v13 = vmax.f32 %v1310_v14, 0.0  ;;  %v1311_v17 = vmul.f32 %v1301_v10, %v1261_v11 }
 0x1ed   : > { %1376 = vrot.lane.b32.xlu0 %v3174_v62, %s2358_s16 }
 0x1ee   : > { %1378 = vrot.lane.b32.xlu1 %v3176_v13, %s2358_s16  ;;  %v3182_v18 = vmax.f32 %v1311_v17, 0.0 }
 0x1f1   : > { %1380 = vrot.lane.b32.xlu0 %v3182_v18, %s2358_s16  ;;  %s3609_s16 = sld [smem:[#allocation16_spill]] }
 0x1f2   : > { %1340 = vrot.lane.b32.xlu1 %v3182_v18, %s2359_s23 }
 0x1f5   : > { %1336 = vrot.lane.b32.xlu0 %v3174_v62, %s2359_s23 }
 0x1f6   : > { %1334 = vrot.lane.b32.xlu1 %v3148_v44, %s2359_s23 }
 0x1f7   : > { %s2015_s1 = sshll.u32 %s3609_s16, 4 }
 0x1f8   : > { %s1725_s11 = sadd.s32 %s2015_s1, %s2014_s3 }
 0x1f9   : > { %1406 = vperm.xlu0 %2138, %v1403_v19  }
 0x1fa   : > { %1338 = vrot.lane.b32.xlu1 %v3176_v13, %s2359_s23  ;;  %s431_s23 = scalar_lea.vmem [#allocation8], %s1890_s10  ;;  %s2016_s10 = sshll.u32 %s1725_s11, 7 }
 0x1fb   : > { %s1729_s21 = sshll.u32 %s431_s23, 4  ;;  %s1727_s19 = scalar_lea.hbm %s3611_s18, %s2016_s10  ;;  %s1730_s21 = int_to_ptr.vmem [resolvable:$true] %s1729_s21 }
 0x1fc   : > { %s2225_s4 = scalar_lea.vmem %s1730_s21, 1024  ;;  %p2232_p10 = scmp.lt.s32.totalorder %s1730_s21, %s2230_s30 }
 0x1fd   : > { %p2226_p9 = scmp.ne.s32.totalorder %s1730_s21, %s2225_s4  ;;  %p2233_p5 = scmp.lt.s32.totalorder %s2231_s14, %s2225_s4 }
 0x1ff   : > { %p2227_p1 = pnand %p2226_p9, %p2509_p11  ;;  %p2234_p12 = por %p2233_p5, %p2232_p10 }
 0x201   : > { %p2228_p3 = pneg %p2227_p1 }
 0x203   : > { %p2235_p2 = pnand %p2234_p12, %p2228_p3 }
 0x239   : > { %v1327_v21 = vpop.permute.xlu1 %1326  ;;  %v1367_v15 = vpop.permute.xlu0 %1366 }
 0x23d   : > { %v1369_v20 = vpop.permute.xlu1 %1368  ;;  %v1329_v23 = vpop.permute.xlu0 %1328 }
 0x23e   : > { %v1388_v30 = vsel %vm3577_vm4, %v1367_v15, %v1369_v20  ;;  %v1348_v35 = vsel %vm3569_vm8, %v1327_v21, %v1329_v23  ;;  %vm3583_vm8 = vnez %v3530_v36 }
 0x241   : > { %v1325_v22 = vpop.permute.xlu1 %1324 }
 0x242   : > { %v1349_v42 = vsel %vm3578_vm15, %v1325_v22, %v1327_v21 }
 0x24d   : > { %v1371_v26 = vpop.permute.xlu1 %1370 }
 0x24e   : > { %v1387_v27 = vsel %vm3576_vm10, %v1369_v20, %v1371_v26  ;;  %vm3581_vm10 = vmmov %vm3577_vm4  ;;  %vm3582_vm4 = vnez %v3534_v43 }
 0x24f   : > { %v1373_v32 = vpop.permute.xlu0 %1372  ;;  %1961 = vmatprep.subr.msk.mxu1 %vm2732_vm0, %v1387_v27 }
 0x250   : > { %1962 = vmatpush1.msk.msra.mxu1 %vm2737_vm2, %v1388_v30  ;;  %v3221_v48 = vsel %vm3581_vm10, %v1371_v26, %v1373_v32 }
 0x251   : > { %1428 = vmatprep.subr.mxu1 %v3106_v55  ;;  %v1375_v40 = vpop.permute.xlu1 %1374 }
 0x252   : > { %1429 = vmatpush1.msra.mxu1 %v3104_v54  ;;  %v3213_v47 = vsel %vm3579_vm6, %v1373_v32, %v1375_v40  ;;  %vm3584_vm6 = vmmov %vm3578_vm15 }
 0x253   : > { %v3215_v24 = vpop.permute.xlu0 %1332  ;;  %1963 = vmatprep.subr.msk.mxu1 %vm3580_vm9, %v1348_v35  ;;  %1974 = vmatprep.subr.msk.mxu0 %vm2749_vm3, %v3213_v47  ;;  %vm3586_vm3 = vnez %v3538_v50 }
 0x254   : > { %1964 = vmatpush1.msk.msra.mxu1 %vm3582_vm4, %v1349_v42  ;;  %1975 = vmatpush1.msk.msra.mxu0 %vm3583_vm8, %v3221_v48 }
 0x255   : > { %1965 = vmatprep.subr.msk.mxu1 %vm2737_vm2, %v1388_v30  ;;  %1499 = vmatprep.subr.mxu0 %v3140_v31  ;;  %v1331_v56 = vpop.permute.xlu1 %1330 }
 0x256   : > { %v3237_v57 = vsel %vm3578_vm15, %v1331_v56, %v3215_v24  ;;  %v3241_v61 = vsel %vm3584_vm6, %v1329_v23, %v1331_v56  ;;  %1500 = vmatpush1.msra.mxu0 %v3137_v1  ;;  %vm3587_vm15 = vnez %v3540_v53 }
 0x257   : > { %v1365_v59 = vpop.permute.xlu0 %1364  ;;  %1976 = vmatprep.subr.msk.mxu0 %vm3585_vm1, %v3237_v57 }
 0x258   : > { %v1389_v60 = vsel %vm3581_vm10, %v1365_v59, %v1367_v15  ;;  %1977 = vmatpush1.msk.msra.mxu0 %vm3586_vm3, %v3241_v61  ;;  %vm3588_vm10 = vnez %v3542_v58 }
 0x259   : > { %1966 = vmatpush1.msk.msra.mxu1 %vm3587_vm15, %v1389_v60  ;;  %1978 = vmatprep.subr.msk.mxu0 %vm3583_vm8, %v3221_v48  ;;  %v1323_v3 = vpop.permute.xlu1 %1322  ;;  %vm3589_vm8 = vcmp.lt.s32.totalorder %v2726_v16, 127 }
 0x25a   : > { %1434 = vmatprep.subr.mxu1 %v3104_v54  ;;  %1979 = vmatpush1.msk.msra.mxu0 %vm2732_vm0, %v1387_v27  ;;  %v1350_v37 = vsel %vm3584_vm6, %v1323_v3, %v1325_v22  ;;  %vm3590_vm6 = vcmp.le.s32.totalorder %v2726_v16, 22 }
 0x25b   : > { %v1363_v2 = vpop.permute.xlu0 %1362  ;;  %1435 = vmatpush1.msra.mxu1 %v3120_v63  ;;  %1505 = vmatprep.subr.mxu0 %v3137_v1 }
 0x25c   : > { %1967 = vmatprep.subr.msk.mxu1 %vm3582_vm4, %v1349_v42  ;;  %1506 = vmatpush1.msra.mxu0 %v3106_v55  ;;  %v1390_v38 = vsel %vm3589_vm8, %v1363_v2, %v1365_v59 }
 0x25d   : > { %1968 = vmatpush1.msk.msra.mxu1 %vm3588_vm10, %v1350_v37  ;;  %1980 = vmatprep.subr.msk.mxu0 %vm3586_vm3, %v3241_v61 }
 0x25e   : > { %1969 = vmatprep.subr.msk.mxu1 %vm3587_vm15, %v1389_v60  ;;  %1981 = vmatpush1.msk.msra.mxu0 %vm3580_vm9, %v1348_v35  ;;  %vm3595_vm15 = vcmp.ge.s32.totalorder %v2726_v16, 1 }
 0x25f   : > { %v1377_v51 = vpop.permute.xlu0 %1376  ;;  %1970 = vmatpush1.msk.msra.mxu1 %vm3590_vm6, %v1390_v38  ;;  %1982 = vmatprep.subr.msk.mxu0 %vm2732_vm0, %v1387_v27  ;;  %vm3592_vm0 = vmmov %vm3589_vm8  ;;  %vm3594_vm8 = vcmp.lt.s32.totalorder %v2726_v16, 1 }
 0x260   : > { %v1379_v8 = vpop.permute.xlu1 %1378  ;;  %1440 = vmatprep.subr.mxu1 %v3120_v63  ;;  %1983 = vmatpush1.msk.msra.mxu0 %vm2737_vm2, %v1388_v30  ;;  %vm3593_vm2 = vmmov %vm3592_vm0 }
 0x261   : > { %1441 = vmatpush1.msra.mxu1 %v3165_v4  ;;  %1511 = vmatprep.subr.mxu0 %v3106_v55  ;;  %vm3597_vm6 = vmmov %vm3592_vm0  ;;  %v1384_v4 = vsel %vm3592_vm0, %v1375_v40, %v1377_v51 }
 0x262   : > { %1971 = vmatprep.subr.msk.mxu1 %vm3588_vm10, %v1350_v37  ;;  %1512 = vmatpush1.msra.mxu0 %v3104_v54  ;;  %vm3596_vm10 = vcmask 588800   ;;  %v1383_v54 = vsel %vm3597_vm6, %v1377_v51, %v1379_v8  ;;  %vm3605_vm6 = vnez %v3562_v49 }
 0x263   : > { %v1381_v53 = vpop.permute.xlu0 %1380  ;;  %1984 = vmatprep.subr.msk.mxu0 %vm3580_vm9, %v1348_v35  ;;  %vm3598_vm9 = vmmov %vm3596_vm10 }
 0x264   : > { %v1391_v63 = vsel %vm3592_vm0, %v1381_v53, %v1363_v2  ;;  %v1341_v29 = vpop.permute.xlu1 %1340  ;;  %v1382_v55 = vsel %vm3593_vm2, %v1379_v8, %v1381_v53  ;;  %1985 = vmatpush1.msk.msra.mxu0 %vm3582_vm4, %v1349_v42  ;;  %vm3599_vm2 = vnez %v3545_v0  ;;  %vm3601_vm4 = vmmov %vm3594_vm8 }
 0x265   : > { %v1351_v58 = vsel %vm3594_vm8, %v1341_v29, %v1323_v3  ;;  %1986 = vmatmul.mubr.msk.f32.vlgmr.msra.gmra.mxu0 %vm3596_vm10, %v1402_v25  ;;  %2000 = vmatprep.subr.msk.mxu0 %vm2908_vm14, %v1391_v63  ;;  %vm3600_vm14 = vmmov %vm3594_vm8  ;;  %vm3604_vm10 = vnez %v3528_v33 }
 0x266   : > { %1972 = vmatpush1.msk.msra.mxu1 %vm3595_vm15, %v1351_v58  ;;  %2001 = vmatpush1.msk.msra.mxu0 %vm2918_vm11, %v1382_v55  ;;  %vm3602_vm8 = vmmov %vm3601_vm4 }
 0x267   : > { %1973 = vmatmul.mubr.msk.f32.vlgmr.msra.gmra.mxu1 %vm3598_vm9, %v1402_v25  ;;  %v1337_v39 = vpop.permute.xlu0 %1336  ;;  %1987 = vmatprep.subr.msk.mxu1 %vm3599_vm2, %v1383_v54  ;;  %vm3603_vm15 = vmmov %vm3601_vm4 }
 0x268   : > { %v1335_v43 = vpop.permute.xlu1 %1334  ;;  %1988 = vmatpush1.msk.msra.mxu1 %vm2904_vm12, %v1384_v4  ;;  %1641 = vmatprep.subr.mxu0 %v3182_v18 }
 0x269   : > { %v1344_v6 = vsel %vm3600_vm14, %v1335_v43, %v1337_v39  ;;  %1570 = vmatprep.subr.mxu1 %v3174_v62  ;;  %1642 = vmatpush1.msra.mxu0 %v3176_v13  ;;  %v1345_v9 = vsel %vm3601_vm4, %v3215_v24, %v1335_v43 }
 0x26a   : > { %1571 = vmatpush1.msra.mxu1 %v3148_v44  ;;  %1618 = vmatprep.mubr.f32.mxu1 %v2360_v7 }
 0x26b   : > { %1989 = vmatprep.subr.msk.mxu1 %vm2946_vm5, %v1344_v6  ;;  %1689 = vmatprep.mubr.f32.mxu0 %v2360_v7 }
 0x26c   : > { %v1339_v12 = vpop.permute.xlu1 %1338  ;;  %1990 = vmatpush1.msk.msra.mxu1 %vm2951_vm13, %v1345_v9 }
 0x26d   : > { %v1342_v52 = vsel %vm3602_vm8, %v1339_v12, %v1341_v29  ;;  %v1343_v10 = vsel %vm3603_vm15, %v1337_v39, %v1339_v12  ;;  %1991 = vmatprep.subr.msk.mxu1 %vm2904_vm12, %v1384_v4 }
 0x26e   : > { %2002 = vmatprep.subr.msk.mxu0 %vm2968_vm7, %v1342_v52  ;;  %1992 = vmatpush1.msk.msra.mxu1 %vm3604_vm10, %v3213_v47  ;;  %vm3606_vm7 = vnez %v3530_v36 }
 0x26f   : > { %2003 = vmatpush1.msk.msra.mxu0 %vm3605_vm6, %v1343_v10  ;;  %1576 = vmatprep.subr.mxu1 %v3148_v44 }
 0x270   : > { %2004 = vmatprep.subr.msk.mxu0 %vm2918_vm11, %v1382_v55  ;;  %1577 = vmatpush1.msra.mxu1 %v3140_v31  ;;  %vm3607_vm11 = vmmov %vm3598_vm9 }
 0x271   : > { %2005 = vmatpush1.msk.msra.mxu0 %vm3599_vm2, %v1383_v54  ;;  %1993 = vmatprep.subr.msk.mxu1 %vm2951_vm13, %v1345_v9 }
 0x272   : > { %1647 = vmatprep.subr.mxu0 %v3176_v13  ;;  %1994 = vmatpush1.msk.msra.mxu1 %vm3585_vm1, %v3237_v57 }
 0x273   : > { %1648 = vmatpush1.msra.mxu0 %v3174_v62  ;;  %1995 = vmatprep.subr.msk.mxu1 %vm3604_vm10, %v3213_v47 }
 0x274   : > { %2006 = vmatprep.subr.msk.mxu0 %vm3605_vm6, %v1343_v10  ;;  %1996 = vmatpush1.msk.msra.mxu1 %vm3606_vm7, %v3221_v48  ;;  %v1407_v7 = vpop.permute.xlu0 %1406 }
 0x275   : > { %2007 = vmatpush1.msk.msra.mxu0 %vm2946_vm5, %v1344_v6  ;;  %1582 = vmatprep.subr.mxu1 %v3140_v31 }
 0x276   : > { %2008 = vmatprep.subr.msk.mxu0 %vm3599_vm2, %v1383_v54  ;;  %1583 = vmatpush1.msra.mxu1 %v3137_v1 }
 0x277   : > { %2009 = vmatpush1.msk.msra.mxu0 %vm2904_vm12, %v1384_v4  ;;  %1997 = vmatprep.subr.msk.mxu1 %vm3585_vm1, %v3237_v57  ;;  %vm3608_vm12 = vmmov %vm3598_vm9 }
 0x278   : > { %1653 = vmatprep.subr.mxu0 %v3174_v62  ;;  %1998 = vmatpush1.msk.msra.mxu1 %vm3586_vm3, %v3241_v61 }
 0x279   : > { %1654 = vmatpush1.msra.mxu0 %v3148_v44  ;;  %1999 = vmatmul.mubr.msk.f32.vlgmr.msra.gmra.mxu1 %vm3607_vm11, %v1402_v25 }
 0x27a   : > { %2010 = vmatprep.subr.msk.mxu0 %vm2946_vm5, %v1344_v6 }
 0x27b   : > { %2011 = vmatpush1.msk.msra.mxu0 %vm2951_vm13, %v1345_v9 }
 0x27c   : > { %2012 = vmatmul.mubr.msk.f32.vlgmr.msra.gmra.mxu0 %vm3608_vm12, %v1402_v25 }
 0x325   : > { %v1549_v16 = vpop.f32.mrf.mxu0 }
 0x326   : > { %v1550_v33 = vadd.f32 %v1549_v16, %v1407_v7 }
 0x327   : > { %v1478_v36 = vpop.f32.mrf.mxu1  ;;  %v1551_v50 = vpop.f32.mrf.mxu0 }
 0x328   : > { %v1479_v46 = vadd.f32 %v1478_v36, %v1407_v7  ;;  %v1698_v0 = vmax.f32 %v1550_v33, 0.0  ;;  %v1552_v5 = vadd.f32 %v1551_v50, %v1407_v7 }
 0x329   : > { %v1480_v28 = vpop.f32.mrf.mxu1 }
 0x32a   : > { %v1696_v45 = vmax.f32 %v1479_v46, 0.0  ;;  %v1481_v49 = vadd.f32 %v1480_v28, %v1407_v7  ;;  %1706 = vst [vmem:[%s431_s23 + $0x10] sm:$0xff] %v1698_v0  ;;  %v1699_v34 = vmax.f32 %v1552_v5, 0.0 }
 0x32c   : > { %1704 = vst [vmem:[%s431_s23] sm:$0xff] %v1696_v45  ;;  %v1697_v41 = vmax.f32 %v1481_v49, 0.0  ;;  %1707 = vst [vmem:[%s431_s23 + $0x18] sm:$0xff] %v1699_v34 }
 0x32e   : > { %1705 = vst [vmem:[%s431_s23 + $0x8] sm:$0xff] %v1697_v41 }
 0x339   : > { %v1620_v1 = vpop.f32.mrf.mxu1 }
 0x33a   : > { %v1621_v31 = vadd.f32 %v1620_v1, %v1407_v7 }
 0x33b   : > { %v1622_v44 = vpop.f32.mrf.mxu1 }
 0x33c   : > { %v1691_v14 = vpop.f32.mrf.mxu0  ;;  %v1700_v11 = vmax.f32 %v1621_v31, 0.0  ;;  %v1623_v62 = vadd.f32 %v1622_v44, %v1407_v7 }
 0x33d   : > { %v1692_v13 = vadd.f32 %v1691_v14, %v1407_v7 }
 0x33e   : > { %v1693_v17 = vpop.f32.mrf.mxu0  ;;  %1708 = vst [vmem:[%s431_s23 + $0x20] sm:$0xff] %v1700_v11  ;;  %v1701_v18 = vmax.f32 %v1623_v62, 0.0 }
 0x33f   : > { %v1702_v19 = vmax.f32 %v1692_v13, 0.0  ;;  %v1694_v21 = vadd.f32 %v1693_v17, %v1407_v7 }
 0x340   : > { %1709 = vst [vmem:[%s431_s23 + $0x28] sm:$0xff] %v1701_v18 }
 0x341   : > { %1710 = vst [vmem:[%s431_s23 + $0x30] sm:$0xff] %v1702_v19  ;;  %v1703_v20 = vmax.f32 %v1694_v21, 0.0 }
 0x343   : > { %1711 = vst [vmem:[%s431_s23 + $0x38] sm:$0xff] %v1703_v20 }
 0x344   : > { %2238 = shalt.err (!%p2235_p2)
}
 0x345   : > { %s2239_s17 = scalar_lea.hbm %s1727_s19, 1024  ;;  %s2243_s24 = scalar_lea.hbm %s3611_s18, 4096 }
 0x346   : > { %p2240_p6 = scmp.ne.s32.totalorder %s1727_s19, %s2239_s17  ;;  %p2244_p4 = scmp.lt.s32.totalorder %s1727_s19, %s3611_s18 }
 0x347   : > { %p2245_p8 = scmp.lt.s32.totalorder %s2243_s24, %s2239_s17 }
 0x348   : > { %p2241_p0 = pnand %p2240_p6, %p2509_p11 }
 0x349   : > { %p2246_p9 = por %p2245_p8, %p2244_p4 }
 0x34a   : > { %p2242_p7 = pneg %p2241_p0 }
 0x34c   : > { %p2247_p1 = pnand %p2246_p9, %p2242_p7 }
 0x34e   : > { %2250 = shalt.err (!%p2247_p1)
}
 0x34f   : > { %2027 = dma.vmem_to_hbm [thread:$0]  (%p2509_p11), %s1730_s21, 1024, %s1727_s19, %s1713_s12  }
 0x350 PF: > { %s3612_s23 = sld [smem:[#allocation13_spill]]  ;;  %p2044_p3 = scmp.ge.s32.totalorder %s2353_s15, 2 }
 0x352   : > { %p2040_p10 = pnand %p2044_p3, %p2513_p13 }
 0x354   : > { %p2041_p5 = pneg %p2040_p10 }
 0x356   : > { %s1741_s1 = sand.u32 1, %s3612_s23  }
 0x357   : > { %s1742_s11 = scalar_lea.sflag [#allocation4], %s1741_s1 }
 0x358   : > { %2308 = dma.done.wait (%p2041_p5), %s1742_s11, 1024  }
 0x359   : > { %2310 = vsyncadd (%p2041_p5), %s1742_s11, 4294966272  ;;  %s27_s15 = sadd.s32 1, %s2353_s15   ;;  %s3614_s10 = sld [smem:[#allocation14_spill]] }
 0x35a   : > { %p24_p12 = scmp.ge.s32.totalorder %s27_s15, 6   ;;  %s3615_s21 = sld [smem:[#allocation22_spill]] }
 0x35b   : > { %s3616_s12 = sld [smem:[#allocation17_spill]]  ;;  %s3619_s27 = smov %s2317_s28 }
 0x35c   : > { %s3617_s20 = sld [smem:[#allocation18_spill]]  ;;  %s3620_s28 = smov %s2321_s29 }
 0x35d   : > { %s3618_s14 = sld [smem:[#allocation19_spill]]  ;;  %s3621_s29 = smov %s2575_s8 }
 0x35e   : > { %s3622_s30 = smov %s2329_s9  ;;  %s3625_s11 = smov %s2345_s13 }
 0x35f   : > { %s3623_s9 = smov %s3614_s10  ;;  %26 = sbr.rel (!%p24_p12) target bundleno = 18 (0x12), region = 124 }
 0x360   : > { %s3624_s10 = smov %s3615_s21 }
 0x362   : > { %s3626_s13 = smov %s3617_s20 }
 0x364   :  { %1747 = vsyncpa [#allocation3], 1 }
 0x365   :  { %1749 = vsyncpa [#allocation3 + $0x1], 1 }
 0x366   :  { %1750 = vsyncpa [#allocation6], 1 }
 0x367   :  { %1752 = vsyncpa [#allocation6 + $0x1], 1 }
 0x368   :  { %1753 = vsyncpa [#allocation4], 1 }
 0x369   :  { %1755 = vsyncpa [#allocation4 + $0x1], 1 }

</bundles_post_ra>
